<compile_context>
chip_gen: v5e
topology: v5e:2x2
jax: 0.10.0
libtpu: 0.0.40
codegen_flags: <defaults>
</compile_context>

<pallas_src>
import functools
import math

import jax
import jax.numpy as jnp
from jax.experimental import pallas as pl
from jax.experimental.pallas import tpu as pltpu


# ----------------------------- fused stage kernel --------------------------

def _rmsnorm(x, w, eps):
    var = jnp.mean(x * x, axis=-1, keepdims=True)
    return x * jax.lax.rsqrt(var + eps) * w


def _stage_kernel(h_ref, cos_ref, sin_ref, mask_ref,
                  ln1_ref, wqkv_ref, bqkv_ref, wo_ref,
                  ln2_ref, wgu_ref, wd_ref,
                  out_ref,
                  *, n_heads, n_kv_heads, head_dim, inter, eps, seq):
    """Grid = (batch, layer). One grid step == one decoder layer on one batch
    block; the hidden state is carried across layers inside out_ref (VMEM)."""
    layer = pl.program_id(1)

    @pl.when(layer == 0)
    def _():
        out_ref[...] = h_ref[...]          # (re)initialize carry for this batch

    D = head_dim
    rep = n_heads // n_kv_heads
    QD = n_heads * D
    KD = n_kv_heads * D
    S = seq

    # fused projection column offsets: [q | q_rot | k | k_rot | v | pad]
    oq, oqr = 0, QD
    ok, okr, ov = 2 * QD, 2 * QD + KD, 2 * QD + 2 * KD

    h = out_ref[...]                                       # [S, H]

    # --------------------- self-attention block ---------------------
    x = _rmsnorm(h, ln1_ref[...], eps)

    qkv = jnp.dot(x, wqkv_ref[...],
                  preferred_element_type=jnp.float32) + bqkv_ref[...]   # [S, Fp]

    # stack heads along sublanes -> [n_heads*S, D]; GQA repeat is folded into
    # the stacking (each query head picks its shared KV group's columns).
    q_lin = jnp.concatenate(
        [qkv[:, oq + hh * D: oq + (hh + 1) * D] for hh in range(n_heads)], axis=0)
    qr_lin = jnp.concatenate(
        [qkv[:, oqr + hh * D: oqr + (hh + 1) * D] for hh in range(n_heads)], axis=0)
    k_lin = jnp.concatenate(
        [qkv[:, ok + (hh // rep) * D: ok + (hh // rep + 1) * D]
         for hh in range(n_heads)], axis=0)
    kr_lin = jnp.concatenate(
        [qkv[:, okr + (hh // rep) * D: okr + (hh // rep + 1) * D]
         for hh in range(n_heads)], axis=0)
    v_stk = jnp.concatenate(
        [qkv[:, ov + (hh // rep) * D: ov + (hh // rep + 1) * D]
         for hh in range(n_heads)], axis=0)

    # RoPE (rotate_half + 1/sqrt(D) already folded into the weights)
    cos = cos_ref[...]                                    # [n_heads*S, D]
    sin = sin_ref[...]
    q_stk = q_lin * cos + qr_lin * sin
    k_stk = k_lin * cos + kr_lin * sin

    # single block-diagonal attention: one score matmul, one softmax, one PV
    s = jax.lax.dot_general(q_stk, k_stk, (((1,), (1,)), ((), ())),
                            preferred_element_type=jnp.float32)          # [nH*S, nH*S]
    s = s + mask_ref[...]                                 # same-head & decoder mask
    s = s - jnp.max(s, axis=-1, keepdims=True)
    p = jnp.exp(s)
    p = p * pl.reciprocal(jnp.sum(p, axis=-1, keepdims=True), approx=True)
    attn_stk = jnp.dot(p, v_stk, preferred_element_type=jnp.float32)     # [nH*S, D]

    # un-stack heads back to [S, n_heads*D] for the output projection
    attn = jnp.concatenate(
        [attn_stk[hh * S:(hh + 1) * S, :] for hh in range(n_heads)], axis=1)
    h = h + jnp.dot(attn, wo_ref[...], preferred_element_type=jnp.float32)

    # --------------------------- MLP block ---------------------------
    x2 = _rmsnorm(h, ln2_ref[...], eps)
    gu = jnp.dot(x2, wgu_ref[...], preferred_element_type=jnp.float32)   # [S, 2I]
    g = gu[:, :inter]
    u = gu[:, inter:]
    h = h + jnp.dot((g * jax.nn.sigmoid(g)) * u, wd_ref[...],
                    preferred_element_type=jnp.float32)

    out_ref[...] = h


# ----------------------------- JAX-side prep -------------------------------

def rotary_embedding(position_ids, head_dim, rope_theta):
    # Qwen2RotaryEmbedding (default rope, attention_scaling = 1.0)
    inv_freq = 1.0 / (
        rope_theta
        ** (jnp.arange(0, head_dim, 2, dtype=jnp.float32) / head_dim)
    )
    freqs = position_ids.astype(jnp.float32)[:, :, None] * inv_freq[None, None, :]
    emb = jnp.concatenate([freqs, freqs], axis=-1)        # [B, S, D]
    return jnp.cos(emb), jnp.sin(emb)


def _rotate_half_matrix(head_dim, n_blocks):
    """Block-diagonal matrix R so that (x @ R) == rotate_half(x) per head."""
    half = head_dim // 2
    idx = jnp.arange(half)
    r = jnp.zeros((head_dim, head_dim), jnp.float32)
    r = r.at[idx + half, idx].set(-1.0)   # out[i] = -x[i+half],  i < half
    r = r.at[idx, idx + half].set(1.0)    # out[i] =  x[i-half],  i >= half
    return jnp.kron(jnp.eye(n_blocks, dtype=jnp.float32), r)


def stage_inner(hidden_states, decoder_attn_mask, position_ids, params, cfg):
    B, S, H = hidden_states.shape
    nH, nKV = cfg["n_heads"], cfg["n_kv_heads"]
    D, inter = cfg["head_dim"], cfg["intermediate"]
    L = len(params)
    QD, KD = nH * D, nKV * D
    F = 2 * QD + 3 * KD
    Fp = ((F + 127) // 128) * 128          # lane-dense fused-projection width
    scale = 1.0 / math.sqrt(D)
    NEG = jnp.float32(-1e30)               # finite mask value (not finfo.min)

    # rotary tables in stacked-head layout: [B, nH*S, D]
    cos, sin = rotary_embedding(position_ids, D, cfg["rope_theta"])
    cos_st = jnp.tile(cos, (1, nH, 1))
    sin_st = jnp.tile(sin, (1, nH, 1))

    # per-batch stacked additive mask [B, nH*S, nH*S]:
    # same-head blocks carry the decoder mask, cross-head blocks are masked.
    # TODO(synk): for long sequences generate this in-kernel from
    # broadcasted_iota / the [B,1,S,S] mask instead of materializing O((nH*S)^2).
    head_of = jnp.arange(nH * S) // S
    same_head = head_of[:, None] == head_of[None, :]
    dec = jnp.maximum(decoder_attn_mask[:, 0].astype(jnp.float32), NEG)  # [B,S,S]
    mask_st = jnp.where(same_head[None], jnp.tile(dec, (1, nH, nH)), NEG)

    # fold rotate_half and 1/sqrt(D) into the projection weights (one-time prep)
    Rq = _rotate_half_matrix(D, nH)
    Rk = _rotate_half_matrix(D, nKV)

    ln1, wqkv, bqkv, wo, ln2, wgu, wd = [], [], [], [], [], [], []
    for p in params:
        wq_s, bq_s = p["wq_t"] * scale, p["bq"] * scale
        w = jnp.concatenate(
            [wq_s, wq_s @ Rq, p["wk_t"], p["wk_t"] @ Rk, p["wv_t"]], axis=1)
        b = jnp.concatenate(
            [bq_s, bq_s @ Rq, p["bk"], p["bk"] @ Rk, p["bv"]])
        wqkv.append(jnp.pad(w, ((0, 0), (0, Fp - F))))                 # [H, Fp]
        bqkv.append(jnp.pad(b, (0, Fp - F))[None, :])                  # [1, Fp]
        ln1.append(p["ln1"][None, :])
        wo.append(p["wo_t"])
        ln2.append(p["ln2"][None, :])
        wgu.append(jnp.concatenate([p["wg_t"], p["wu_t"]], axis=1))    # [H, 2I]
        wd.append(p["wd_t"])
    ln1_all, wqkv_all, bqkv_all = jnp.stack(ln1), jnp.stack(wqkv), jnp.stack(bqkv)
    wo_all, ln2_all = jnp.stack(wo), jnp.stack(ln2)
    wgu_all, wd_all = jnp.stack(wgu), jnp.stack(wd)

    kernel = functools.partial(
        _stage_kernel, n_heads=nH, n_kv_heads=nKV, head_dim=D,
        inter=inter, eps=cfg["rms_eps"], seq=S)

    def per_batch(d0, d1):
        return pl.BlockSpec((pl.Squeezed(), d0, d1), lambda b, l: (b, 0, 0))

    def per_layer(d0, d1):
        return pl.BlockSpec((pl.Squeezed(), d0, d1), lambda b, l: (l, 0, 0))

    hid_spec = pl.BlockSpec((S, H), lambda b, l: (b, 0))

    out = pl.pallas_call(
        kernel,
        out_shape=jax.ShapeDtypeStruct((B * S, H), jnp.float32),
        grid=(B, L),                       # batch: parallel (v7x), layer: carry
        in_specs=[
            hid_spec,                      # hidden states (aliased with output)
            per_batch(nH * S, D),          # cos, stacked-head layout
            per_batch(nH * S, D),          # sin
            per_batch(nH * S, nH * S),     # stacked block-diagonal mask
            per_layer(1, H),               # input layernorm weight
            per_layer(H, Fp),              # fused q|q_rot|k|k_rot|v weight
            per_layer(1, Fp),              # fused bias
            per_layer(QD, H),              # o_proj weight
            per_layer(1, H),               # post-attn layernorm weight
            per_layer(H, 2 * inter),       # fused gate|up weight (lane-dense)
            per_layer(inter, H),           # down_proj weight
        ],
        out_specs=hid_spec,
        input_output_aliases={0: 0},       # reuse the hidden HBM buffer
        compiler_params=pltpu.CompilerParams(
            dimension_semantics=("parallel", "arbitrary"),
            vmem_limit_bytes=32 * 1024 * 1024),   # v5e scoped default is 16 MiB
    )(hidden_states.reshape(B * S, H), cos_st, sin_st, mask_st,
      ln1_all, wqkv_all, bqkv_all, wo_all, ln2_all, wgu_all, wd_all)

    return out.reshape(B, S, H)


# ----------------------------- pure-JAX reference --------------------------

def _reference(hidden_states, decoder_attn_mask, position_ids, params, cfg):
    B, S, H = hidden_states.shape
    nH, nKV, D = cfg["n_heads"], cfg["n_kv_heads"], cfg["head_dim"]
    eps = cfg["rms_eps"]
    cos, sin = rotary_embedding(position_ids, D, cfg["rope_theta"])
    cos4, sin4 = cos[:, None], sin[:, None]

    def rms(x, w):
        var = jnp.mean(x * x, axis=-1, keepdims=True)
        return x * jax.lax.rsqrt(var + eps) * w

    def rot_half(x):
        d = x.shape[-1] // 2
        return jnp.concatenate([-x[..., d:], x[..., :d]], axis=-1)

    h = hidden_states
    for p in params:
        res = h
        x = rms(h, p["ln1"]).reshape(B * S, H)
        q = (x @ p["wq_t"] + p["bq"]).reshape(B, S, nH, D).transpose(0, 2, 1, 3)
        k = (x @ p["wk_t"] + p["bk"]).reshape(B, S, nKV, D).transpose(0, 2, 1, 3)
        v = (x @ p["wv_t"] + p["bv"]).reshape(B, S, nKV, D).transpose(0, 2, 1, 3)
        q = q * cos4 + rot_half(q) * sin4
        k = k * cos4 + rot_half(k) * sin4
        rep = nH // nKV
        k = jnp.repeat(k, rep, axis=1)
        v = jnp.repeat(v, rep, axis=1)
        sc = jnp.einsum("bhqd,bhkd->bhqk", q, k) / math.sqrt(D) + decoder_attn_mask
        pr = jax.nn.softmax(sc, axis=-1)
        at = jnp.einsum("bhqk,bhkd->bhqd", pr, v)
        at = at.transpose(0, 2, 1, 3).reshape(B * S, nH * D)
        h = res + (at @ p["wo_t"]).reshape(B, S, H)
        res = h
        x2 = rms(h, p["ln2"]).reshape(B * S, H)
        g = x2 @ p["wg_t"]
        u = x2 @ p["wu_t"]
        m = ((g * jax.nn.sigmoid(g)) * u) @ p["wd_t"]
        h = res + m.reshape(B, S, H)
    return h


# ----------------------------- parameter init ------------------------------

def init_layer_params(key, cfg):
    H, nH, nKV, D, inter = (
        cfg["hidden"], cfg["n_heads"], cfg["n_kv_heads"],
        cfg["head_dim"], cfg["intermediate"],
    )
    ks = jax.random.split(key, 8)
    std = 0.02
    qdim, kvdim = nH * D, nKV * D
    return {
        "ln1": jnp.ones((H,), jnp.float32),
        "ln2": jnp.ones((H,), jnp.float32),
        # weights stored pre-transposed ([in, out]) so kernels do plain x @ W
        "wq_t": std * jax.random.normal(ks[0], (H, qdim), jnp.float32),
        "bq": std * jax.random.normal(ks[1], (qdim,), jnp.float32),
        "wk_t": std * jax.random.normal(ks[2], (H, kvdim), jnp.float32),
        "bk": std * jax.random.normal(ks[3], (kvdim,), jnp.float32),
        "wv_t": std * jax.random.normal(ks[4], (H, kvdim), jnp.float32),
        "bv": std * jax.random.normal(ks[5], (kvdim,), jnp.float32),
        "wo_t": std * jax.random.normal(ks[6], (qdim, H), jnp.float32),  # no bias
        "wg_t": std * jax.random.normal(jax.random.fold_in(ks[7], 0), (H, inter), jnp.float32),
        "wu_t": std * jax.random.normal(jax.random.fold_in(ks[7], 1), (H, inter), jnp.float32),
        "wd_t": std * jax.random.normal(jax.random.fold_in(ks[7], 2), (inter, H), jnp.float32),
    }


# ----------------------------- main ----------------------------------------

if __name__ == "__main__":
    jax.config.update("jax_default_matmul_precision", "float32")

    cfg = dict(
        hidden=32, n_heads=4, n_kv_heads=2, head_dim=8,
        intermediate=64, n_layers=2, rope_theta=10000.0, rms_eps=1e-6,
    )
    B, S, H = 2, 8, cfg["hidden"]

    key = jax.random.PRNGKey(0)
    k_h, k_p = jax.random.split(key)
    params = [
        init_layer_params(jax.random.fold_in(k_p, l), cfg)
        for l in range(cfg["n_layers"])
    ]

    hidden_states = jax.random.normal(k_h, (B, S, H), jnp.float32)
    position_ids = jnp.broadcast_to(jnp.arange(S, dtype=jnp.int32), (B, S))

    # additive causal mask [B, 1, S, S]: 0 where allowed, -1e30 elsewhere
    causal = jnp.where(
        jnp.arange(S)[:, None] >= jnp.arange(S)[None, :], 0.0, -1e30
    ).astype(jnp.float32)
    decoder_attn_mask = jnp.broadcast_to(causal, (B, 1, S, S))

    out = jax.jit(functools.partial(stage_inner, cfg=cfg))(
        hidden_states, decoder_attn_mask, position_ids, params
    )
    jax.block_until_ready(out)
    assert out.shape == (B, S, H) and out.dtype == jnp.float32

    ref = _reference(hidden_states, decoder_attn_mask, position_ids, params, cfg)
    err = float(jnp.max(jnp.abs(out - ref)))
    assert err < 5e-3, f"mismatch vs reference: {err}"

    print("KERNEL_OK")
</pallas_src>

<mosaic_0001>
module attributes {stable_mosaic.version = 11 : i64} {
  func.func @_stage_kernel(%arg0: i32, %arg1: i32, %arg2: memref<8x32xf32, #tpu.memory_space<vmem>>, %arg3: memref<1x32x8xf32, #tpu.memory_space<vmem>>, %arg4: memref<1x32x8xf32, #tpu.memory_space<vmem>>, %arg5: memref<1x32x32xf32, #tpu.memory_space<vmem>>, %arg6: memref<1x1x32xf32, #tpu.memory_space<vmem>>, %arg7: memref<1x32x128xf32, #tpu.memory_space<vmem>>, %arg8: memref<1x1x128xf32, #tpu.memory_space<vmem>>, %arg9: memref<1x32x32xf32, #tpu.memory_space<vmem>>, %arg10: memref<1x1x32xf32, #tpu.memory_space<vmem>>, %arg11: memref<1x32x128xf32, #tpu.memory_space<vmem>>, %arg12: memref<1x64x32xf32, #tpu.memory_space<vmem>>, %arg13: memref<8x32xf32, #tpu.memory_space<vmem>>) attributes {dimension_semantics = [#tpu.dimension_semantics<parallel>, #tpu.dimension_semantics<arbitrary>], iteration_bounds = array<i64: 2, 2>, scalar_prefetch = 0 : i64, scratch_operands = 0 : i64, tpu.core_type = #tpu.core_type<tc>, window_params = [{transform_indices = @transform_0, window_bounds = array<i64: 8, 32>}, {transform_indices = @transform_1, window_bounds = array<i64: 1, 32, 8>}, {transform_indices = @transform_2, window_bounds = array<i64: 1, 32, 8>}, {transform_indices = @transform_3, window_bounds = array<i64: 1, 32, 32>}, {transform_indices = @transform_4, window_bounds = array<i64: 1, 1, 32>}, {transform_indices = @transform_5, window_bounds = array<i64: 1, 32, 128>}, {transform_indices = @transform_6, window_bounds = array<i64: 1, 1, 128>}, {transform_indices = @transform_7, window_bounds = array<i64: 1, 32, 32>}, {transform_indices = @transform_8, window_bounds = array<i64: 1, 1, 32>}, {transform_indices = @transform_9, window_bounds = array<i64: 1, 32, 128>}, {transform_indices = @transform_10, window_bounds = array<i64: 1, 64, 32>}, {transform_indices = @transform_11, window_bounds = array<i64: 8, 32>}]} {
    %c0_i32 = arith.constant 0 : i32
    %0 = arith.cmpi eq, %arg1, %c0_i32 : i32
    %1 = arith.extui %0 : i1 to i32
    %c0_i32_0 = arith.constant 0 : i32
    %2 = arith.cmpi ne, %1, %c0_i32_0 : i32
    scf.if %2 {
      %c0_48 = arith.constant 0 : index
      %c0_49 = arith.constant 0 : index
      %115 = vector.load %arg2[%c0_48, %c0_49] : memref<8x32xf32, #tpu.memory_space<vmem>>, vector<8x32xf32>
      %c0_50 = arith.constant 0 : index
      %c0_51 = arith.constant 0 : index
      %116 = vector.load %arg13[%c0_50, %c0_51] : memref<8x32xf32, #tpu.memory_space<vmem>>, vector<8x32xf32>
      tpu.vector_store %arg13[%c0_50, %c0_51], %115 {strides = array<i32>} : memref<8x32xf32, #tpu.memory_space<vmem>>, vector<8x32xf32>,
    } else {
    }
    %c0 = arith.constant 0 : index
    %c0_1 = arith.constant 0 : index
    %3 = vector.load %arg13[%c0, %c0_1] : memref<8x32xf32, #tpu.memory_space<vmem>>, vector<8x32xf32>
    %c0_2 = arith.constant 0 : index
    %c0_3 = arith.constant 0 : index
    %c0_4 = arith.constant 0 : index
    %4 = vector.load %arg6[%c0_2, %c0_3, %c0_4] : memref<1x1x32xf32, #tpu.memory_space<vmem>>, vector<1x1x32xf32>
    %5 = vector.shape_cast %4 : vector<1x1x32xf32> to vector<1x32xf32>
    %6 = arith.mulf %3, %3 : vector<8x32xf32>
    %cst = arith.constant dense<0.000000e+00> : vector<8xf32>
    %7 = vector.multi_reduction <add>, %6, %cst [1] : vector<8x32xf32> to vector<8xf32>
    %8 = vector.shape_cast %7 : vector<8xf32> to vector<8x1xf32>
    %cst_5 = arith.constant 3.200000e+01 : f32
    %9 = vector.broadcast %cst_5 : f32 to vector<8x1xf32>
    %10 = arith.divf %8, %9 : vector<8x1xf32>
    %cst_6 = arith.constant 9.99999997E-7 : f32
    %11 = vector.broadcast %cst_6 : f32 to vector<8x1xf32>
    %12 = arith.addf %10, %11 : vector<8x1xf32>
    %13 = math.rsqrt %12 : vector<8x1xf32>
    %14 = vector.broadcast %13 : vector<8x1xf32> to vector<8x32xf32>
    %15 = arith.mulf %3, %14 : vector<8x32xf32>
    %16 = vector.broadcast %5 : vector<1x32xf32> to vector<8x32xf32>
    %17 = arith.mulf %15, %16 : vector<8x32xf32>
    %c0_7 = arith.constant 0 : index
    %c0_8 = arith.constant 0 : index
    %c0_9 = arith.constant 0 : index
    %18 = vector.load %arg7[%c0_7, %c0_8, %c0_9] : memref<1x32x128xf32, #tpu.memory_space<vmem>>, vector<1x32x128xf32>
    %19 = vector.shape_cast %18 : vector<1x32x128xf32> to vector<32x128xf32>
    %cst_10 = arith.constant dense<0.000000e+00> : vector<8x128xf32>
    %20 = tpu.matmul %17, %19, %cst_10 {dimension_numbers = #tpu.dot_dimension_numbers<[1], [0], [0], [1], [0, 0, 1, 1], [], []>, precision = #tpu.contract_precision<fp32>} : vector<8x32xf32>, vector<32x128xf32>, vector<8x128xf32> -> vector<8x128xf32>
    %c0_11 = arith.constant 0 : index
    %c0_12 = arith.constant 0 : index
    %c0_13 = arith.constant 0 : index
    %21 = vector.load %arg8[%c0_11, %c0_12, %c0_13] : memref<1x1x128xf32, #tpu.memory_space<vmem>>, vector<1x1x128xf32>
    %22 = vector.shape_cast %21 : vector<1x1x128xf32> to vector<1x128xf32>
    %23 = vector.broadcast %22 : vector<1x128xf32> to vector<8x128xf32>
    %24 = arith.addf %20, %23 : vector<8x128xf32>
    %25 = vector.extract_strided_slice %24 {offsets = [0, 0], sizes = [8, 8], strides = [1, 1]} : vector<8x128xf32> to vector<8x8xf32>
    %26 = vector.extract_strided_slice %24 {offsets = [0, 8], sizes = [8, 8], strides = [1, 1]} : vector<8x128xf32> to vector<8x8xf32>
    %27 = vector.extract_strided_slice %24 {offsets = [0, 16], sizes = [8, 8], strides = [1, 1]} : vector<8x128xf32> to vector<8x8xf32>
    %28 = vector.extract_strided_slice %24 {offsets = [0, 24], sizes = [8, 8], strides = [1, 1]} : vector<8x128xf32> to vector<8x8xf32>
    %29 = tpu.concatenate %25, %26, %27, %28 in 0 : vector<8x8xf32>, vector<8x8xf32>, vector<8x8xf32>, vector<8x8xf32> -> vector<32x8xf32>
    %30 = vector.extract_strided_slice %24 {offsets = [0, 32], sizes = [8, 8], strides = [1, 1]} : vector<8x128xf32> to vector<8x8xf32>
    %31 = vector.extract_strided_slice %24 {offsets = [0, 40], sizes = [8, 8], strides = [1, 1]} : vector<8x128xf32> to vector<8x8xf32>
    %32 = vector.extract_strided_slice %24 {offsets = [0, 48], sizes = [8, 8], strides = [1, 1]} : vector<8x128xf32> to vector<8x8xf32>
    %33 = vector.extract_strided_slice %24 {offsets = [0, 56], sizes = [8, 8], strides = [1, 1]} : vector<8x128xf32> to vector<8x8xf32>
    %34 = tpu.concatenate %30, %31, %32, %33 in 0 : vector<8x8xf32>, vector<8x8xf32>, vector<8x8xf32>, vector<8x8xf32> -> vector<32x8xf32>
    %35 = vector.extract_strided_slice %24 {offsets = [0, 64], sizes = [8, 8], strides = [1, 1]} : vector<8x128xf32> to vector<8x8xf32>
    %36 = vector.extract_strided_slice %24 {offsets = [0, 64], sizes = [8, 8], strides = [1, 1]} : vector<8x128xf32> to vector<8x8xf32>
    %37 = vector.extract_strided_slice %24 {offsets = [0, 72], sizes = [8, 8], strides = [1, 1]} : vector<8x128xf32> to vector<8x8xf32>
    %38 = vector.extract_strided_slice %24 {offsets = [0, 72], sizes = [8, 8], strides = [1, 1]} : vector<8x128xf32> to vector<8x8xf32>
    %39 = tpu.concatenate %35, %36, %37, %38 in 0 : vector<8x8xf32>, vector<8x8xf32>, vector<8x8xf32>, vector<8x8xf32> -> vector<32x8xf32>
    %40 = vector.extract_strided_slice %24 {offsets = [0, 80], sizes = [8, 8], strides = [1, 1]} : vector<8x128xf32> to vector<8x8xf32>
    %41 = vector.extract_strided_slice %24 {offsets = [0, 80], sizes = [8, 8], strides = [1, 1]} : vector<8x128xf32> to vector<8x8xf32>
    %42 = vector.extract_strided_slice %24 {offsets = [0, 88], sizes = [8, 8], strides = [1, 1]} : vector<8x128xf32> to vector<8x8xf32>
    %43 = vector.extract_strided_slice %24 {offsets = [0, 88], sizes = [8, 8], strides = [1, 1]} : vector<8x128xf32> to vector<8x8xf32>
    %44 = tpu.concatenate %40, %41, %42, %43 in 0 : vector<8x8xf32>, vector<8x8xf32>, vector<8x8xf32>, vector<8x8xf32> -> vector<32x8xf32>
    %45 = vector.extract_strided_slice %24 {offsets = [0, 96], sizes = [8, 8], strides = [1, 1]} : vector<8x128xf32> to vector<8x8xf32>
    %46 = vector.extract_strided_slice %24 {offsets = [0, 96], sizes = [8, 8], strides = [1, 1]} : vector<8x128xf32> to vector<8x8xf32>
    %47 = vector.extract_strided_slice %24 {offsets = [0, 104], sizes = [8, 8], strides = [1, 1]} : vector<8x128xf32> to vector<8x8xf32>
    %48 = vector.extract_strided_slice %24 {offsets = [0, 104], sizes = [8, 8], strides = [1, 1]} : vector<8x128xf32> to vector<8x8xf32>
    %49 = tpu.concatenate %45, %46, %47, %48 in 0 : vector<8x8xf32>, vector<8x8xf32>, vector<8x8xf32>, vector<8x8xf32> -> vector<32x8xf32>
    %c0_14 = arith.constant 0 : index
    %c0_15 = arith.constant 0 : index
    %c0_16 = arith.constant 0 : index
    %50 = vector.load %arg3[%c0_14, %c0_15, %c0_16] : memref<1x32x8xf32, #tpu.memory_space<vmem>>, vector<1x32x8xf32>
    %51 = vector.shape_cast %50 : vector<1x32x8xf32> to vector<32x8xf32>
    %c0_17 = arith.constant 0 : index
    %c0_18 = arith.constant 0 : index
    %c0_19 = arith.constant 0 : index
    %52 = vector.load %arg4[%c0_17, %c0_18, %c0_19] : memref<1x32x8xf32, #tpu.memory_space<vmem>>, vector<1x32x8xf32>
    %53 = vector.shape_cast %52 : vector<1x32x8xf32> to vector<32x8xf32>
    %54 = arith.mulf %29, %51 : vector<32x8xf32>
    %55 = arith.mulf %34, %53 : vector<32x8xf32>
    %56 = arith.addf %54, %55 : vector<32x8xf32>
    %57 = arith.mulf %39, %51 : vector<32x8xf32>
    %58 = arith.mulf %44, %53 : vector<32x8xf32>
    %59 = arith.addf %57, %58 : vector<32x8xf32>
    %cst_20 = arith.constant dense<0.000000e+00> : vector<32x32xf32>
    %60 = tpu.matmul %56, %59, %cst_20 {dimension_numbers = #tpu.dot_dimension_numbers<[1], [1], [0], [0], [0, 0, 1, 0], [], []>, precision = #tpu.contract_precision<fp32>} : vector<32x8xf32>, vector<32x8xf32>, vector<32x32xf32> -> vector<32x32xf32>
    %c0_21 = arith.constant 0 : index
    %c0_22 = arith.constant 0 : index
    %c0_23 = arith.constant 0 : index
    %61 = vector.load %arg5[%c0_21, %c0_22, %c0_23] : memref<1x32x32xf32, #tpu.memory_space<vmem>>, vector<1x32x32xf32>
    %62 = vector.shape_cast %61 : vector<1x32x32xf32> to vector<32x32xf32>
    %63 = arith.addf %60, %62 : vector<32x32xf32>
    %cst_24 = arith.constant dense<0xFF800000> : vector<32xf32>
    %64 = vector.multi_reduction <maximumf>, %63, %cst_24 [1] : vector<32x32xf32> to vector<32xf32>
    %65 = vector.shape_cast %64 : vector<32xf32> to vector<32x1xf32>
    %66 = vector.broadcast %65 : vector<32x1xf32> to vector<32x32xf32>
    %67 = arith.subf %63, %66 : vector<32x32xf32>
    %68 = math.exp %67 : vector<32x32xf32>
    %cst_25 = arith.constant dense<0.000000e+00> : vector<32xf32>
    %69 = vector.multi_reduction <add>, %68, %cst_25 [1] : vector<32x32xf32> to vector<32xf32>
    %70 = vector.shape_cast %69 : vector<32xf32> to vector<32x1xf32>
    %71 = tpu.reciprocal %70 {approx = true} : vector<32x1xf32> -> vector<32x1xf32>
    %72 = vector.broadcast %71 : vector<32x1xf32> to vector<32x32xf32>
    %73 = arith.mulf %68, %72 : vector<32x32xf32>
    %cst_26 = arith.constant dense<0.000000e+00> : vector<32x8xf32>
    %74 = tpu.matmul %73, %49, %cst_26 {dimension_numbers = #tpu.dot_dimension_numbers<[1], [0], [0], [1], [0, 0, 1, 1], [], []>, precision = #tpu.contract_precision<fp32>} : vector<32x32xf32>, vector<32x8xf32>, vector<32x8xf32> -> vector<32x8xf32>
    %75 = vector.extract_strided_slice %74 {offsets = [0, 0], sizes = [8, 8], strides = [1, 1]} : vector<32x8xf32> to vector<8x8xf32>
    %76 = vector.extract_strided_slice %74 {offsets = [8, 0], sizes = [8, 8], strides = [1, 1]} : vector<32x8xf32> to vector<8x8xf32>
    %77 = vector.extract_strided_slice %74 {offsets = [16, 0], sizes = [8, 8], strides = [1, 1]} : vector<32x8xf32> to vector<8x8xf32>
    %78 = vector.extract_strided_slice %74 {offsets = [24, 0], sizes = [8, 8], strides = [1, 1]} : vector<32x8xf32> to vector<8x8xf32>
    %79 = tpu.concatenate %75, %76, %77, %78 in 1 : vector<8x8xf32>, vector<8x8xf32>, vector<8x8xf32>, vector<8x8xf32> -> vector<8x32xf32>
    %c0_27 = arith.constant 0 : index
    %c0_28 = arith.constant 0 : index
    %c0_29 = arith.constant 0 : index
    %80 = vector.load %arg9[%c0_27, %c0_28, %c0_29] : memref<1x32x32xf32, #tpu.memory_space<vmem>>, vector<1x32x32xf32>
    %81 = vector.shape_cast %80 : vector<1x32x32xf32> to vector<32x32xf32>
    %cst_30 = arith.constant dense<0.000000e+00> : vector<8x32xf32>
    %82 = tpu.matmul %79, %81, %cst_30 {dimension_numbers = #tpu.dot_dimension_numbers<[1], [0], [0], [1], [0, 0, 1, 1], [], []>, precision = #tpu.contract_precision<fp32>} : vector<8x32xf32>, vector<32x32xf32>, vector<8x32xf32> -> vector<8x32xf32>
    %83 = arith.addf %3, %82 : vector<8x32xf32>
    %c0_31 = arith.constant 0 : index
    %c0_32 = arith.constant 0 : index
    %c0_33 = arith.constant 0 : index
    %84 = vector.load %arg10[%c0_31, %c0_32, %c0_33] : memref<1x1x32xf32, #tpu.memory_space<vmem>>, vector<1x1x32xf32>
    %85 = vector.shape_cast %84 : vector<1x1x32xf32> to vector<1x32xf32>
    %86 = arith.mulf %83, %83 : vector<8x32xf32>
    %cst_34 = arith.constant dense<0.000000e+00> : vector<8xf32>
    %87 = vector.multi_reduction <add>, %86, %cst_34 [1] : vector<8x32xf32> to vector<8xf32>
    %88 = vector.shape_cast %87 : vector<8xf32> to vector<8x1xf32>
    %cst_35 = arith.constant 3.200000e+01 : f32
    %89 = vector.broadcast %cst_35 : f32 to vector<8x1xf32>
    %90 = arith.divf %88, %89 : vector<8x1xf32>
    %cst_36 = arith.constant 9.99999997E-7 : f32
    %91 = vector.broadcast %cst_36 : f32 to vector<8x1xf32>
    %92 = arith.addf %90, %91 : vector<8x1xf32>
    %93 = math.rsqrt %92 : vector<8x1xf32>
    %94 = vector.broadcast %93 : vector<8x1xf32> to vector<8x32xf32>
    %95 = arith.mulf %83, %94 : vector<8x32xf32>
    %96 = vector.broadcast %85 : vector<1x32xf32> to vector<8x32xf32>
    %97 = arith.mulf %95, %96 : vector<8x32xf32>
    %c0_37 = arith.constant 0 : index
    %c0_38 = arith.constant 0 : index
    %c0_39 = arith.constant 0 : index
    %98 = vector.load %arg11[%c0_37, %c0_38, %c0_39] : memref<1x32x128xf32, #tpu.memory_space<vmem>>, vector<1x32x128xf32>
    %99 = vector.shape_cast %98 : vector<1x32x128xf32> to vector<32x128xf32>
    %cst_40 = arith.constant dense<0.000000e+00> : vector<8x128xf32>
    %100 = tpu.matmul %97, %99, %cst_40 {dimension_numbers = #tpu.dot_dimension_numbers<[1], [0], [0], [1], [0, 0, 1, 1], [], []>, precision = #tpu.contract_precision<fp32>} : vector<8x32xf32>, vector<32x128xf32>, vector<8x128xf32> -> vector<8x128xf32>
    %101 = vector.extract_strided_slice %100 {offsets = [0, 0], sizes = [8, 64], strides = [1, 1]} : vector<8x128xf32> to vector<8x64xf32>
    %102 = vector.extract_strided_slice %100 {offsets = [0, 64], sizes = [8, 64], strides = [1, 1]} : vector<8x128xf32> to vector<8x64xf32>
    %103 = arith.negf %101 : vector<8x64xf32>
    %104 = math.exp %103 : vector<8x64xf32>
    %cst_41 = arith.constant 1.000000e+00 : f32
    %105 = vector.broadcast %cst_41 : f32 to vector<8x64xf32>
    %106 = arith.addf %105, %104 : vector<8x64xf32>
    %107 = arith.divf %105, %106 : vector<8x64xf32>
    %108 = arith.mulf %101, %107 : vector<8x64xf32>
    %109 = arith.mulf %108, %102 : vector<8x64xf32>
    %c0_42 = arith.constant 0 : index
    %c0_43 = arith.constant 0 : index
    %c0_44 = arith.constant 0 : index
    %110 = vector.load %arg12[%c0_42, %c0_43, %c0_44] : memref<1x64x32xf32, #tpu.memory_space<vmem>>, vector<1x64x32xf32>
    %111 = vector.shape_cast %110 : vector<1x64x32xf32> to vector<64x32xf32>
    %cst_45 = arith.constant dense<0.000000e+00> : vector<8x32xf32>
    %112 = tpu.matmul %109, %111, %cst_45 {dimension_numbers = #tpu.dot_dimension_numbers<[1], [0], [0], [1], [0, 0, 1, 1], [], []>, precision = #tpu.contract_precision<fp32>} : vector<8x64xf32>, vector<64x32xf32>, vector<8x32xf32> -> vector<8x32xf32>
    %113 = arith.addf %83, %112 : vector<8x32xf32>
    %c0_46 = arith.constant 0 : index
    %c0_47 = arith.constant 0 : index
    %114 = vector.load %arg13[%c0_46, %c0_47] : memref<8x32xf32, #tpu.memory_space<vmem>>, vector<8x32xf32>
    tpu.vector_store %arg13[%c0_46, %c0_47], %113 {strides = array<i32>} : memref<8x32xf32, #tpu.memory_space<vmem>>, vector<8x32xf32>,
    return
  }
  func.func @transform_0(%arg0: i32, %arg1: i32) -> (i32, i32) {
    %c0_i32 = arith.constant 0 : i32
    %c0_i32_0 = arith.constant 0 : i32
    return %arg0, %c0_i32 : i32, i32
  }
  func.func @transform_1(%arg0: i32, %arg1: i32) -> (i32, i32, i32) {
    %c0_i32 = arith.constant 0 : i32
    %c0_i32_0 = arith.constant 0 : i32
    %c0_i32_1 = arith.constant 0 : i32
    return %arg0, %c0_i32, %c0_i32_0 : i32, i32, i32
  }
  func.func @transform_2(%arg0: i32, %arg1: i32) -> (i32, i32, i32) {
    %c0_i32 = arith.constant 0 : i32
    %c0_i32_0 = arith.constant 0 : i32
    %c0_i32_1 = arith.constant 0 : i32
    return %arg0, %c0_i32, %c0_i32_0 : i32, i32, i32
  }
  func.func @transform_3(%arg0: i32, %arg1: i32) -> (i32, i32, i32) {
    %c0_i32 = arith.constant 0 : i32
    %c0_i32_0 = arith.constant 0 : i32
    %c0_i32_1 = arith.constant 0 : i32
    return %arg0, %c0_i32, %c0_i32_0 : i32, i32, i32
  }
  func.func @transform_4(%arg0: i32, %arg1: i32) -> (i32, i32, i32) {
    %c0_i32 = arith.constant 0 : i32
    %c0_i32_0 = arith.constant 0 : i32
    %c0_i32_1 = arith.constant 0 : i32
    return %arg1, %c0_i32, %c0_i32_0 : i32, i32, i32
  }
  func.func @transform_5(%arg0: i32, %arg1: i32) -> (i32, i32, i32) {
    %c0_i32 = arith.constant 0 : i32
    %c0_i32_0 = arith.constant 0 : i32
    %c0_i32_1 = arith.constant 0 : i32
    return %arg1, %c0_i32, %c0_i32_0 : i32, i32, i32
  }
  func.func @transform_6(%arg0: i32, %arg1: i32) -> (i32, i32, i32) {
    %c0_i32 = arith.constant 0 : i32
    %c0_i32_0 = arith.constant 0 : i32
    %c0_i32_1 = arith.constant 0 : i32
    return %arg1, %c0_i32, %c0_i32_0 : i32, i32, i32
  }
  func.func @transform_7(%arg0: i32, %arg1: i32) -> (i32, i32, i32) {
    %c0_i32 = arith.constant 0 : i32
    %c0_i32_0 = arith.constant 0 : i32
    %c0_i32_1 = arith.constant 0 : i32
    return %arg1, %c0_i32, %c0_i32_0 : i32, i32, i32
  }
  func.func @transform_8(%arg0: i32, %arg1: i32) -> (i32, i32, i32) {
    %c0_i32 = arith.constant 0 : i32
    %c0_i32_0 = arith.constant 0 : i32
    %c0_i32_1 = arith.constant 0 : i32
    return %arg1, %c0_i32, %c0_i32_0 : i32, i32, i32
  }
  func.func @transform_9(%arg0: i32, %arg1: i32) -> (i32, i32, i32) {
    %c0_i32 = arith.constant 0 : i32
    %c0_i32_0 = arith.constant 0 : i32
    %c0_i32_1 = arith.constant 0 : i32
    return %arg1, %c0_i32, %c0_i32_0 : i32, i32, i32
  }
  func.func @transform_10(%arg0: i32, %arg1: i32) -> (i32, i32, i32) {
    %c0_i32 = arith.constant 0 : i32
    %c0_i32_0 = arith.constant 0 : i32
    %c0_i32_1 = arith.constant 0 : i32
    return %arg1, %c0_i32, %c0_i32_0 : i32, i32, i32
  }
  func.func @transform_11(%arg0: i32, %arg1: i32) -> (i32, i32) {
    %c0_i32 = arith.constant 0 : i32
    %c0_i32_0 = arith.constant 0 : i32
    return %arg0, %c0_i32 : i32, i32
  }
}

</mosaic_0001>

<bundles_post_ra>
// kernel: tile.29
= control target key start
LH: loop header
LB: loop body
LE: loop exit
PB: predicated region body
PF: predicated region fallthrough
CT: control target
= control target key end

     0   :  { %vm260_vm0 = vcmask 1047556   ;;  %s682_s15 = smov 24   ;;  %s683_s9 = smov 16   ;;  %vm262_vm1 = vcmask 64512   ;;  %vm335_vm2 = vcmask 261312   ;;  %vm422_vm3 = vcmask 195712   ;;  %s1071_s0 = inlined_call_operand.vmem [shape: f32[2,4,8,4,8], index: 0, kind: input, shape index: {}]   ;;  %s1072_s1 = inlined_call_operand.vmem [shape: f32[2,32,32], index: 1, kind: output, shape index: {}]  }
   0x1   :  { %v644_v0 = vld [vmem:[%s1071_s0 + $0x1c] sm:$0xf]  ;;  %v645_v1 = vld [vmem:[%s1071_s0 + $0x18] sm:$0xf]  ;;  %v646_v2 = vld [vmem:[%s1071_s0 + $0x14] sm:$0xf] }
   0x2   :  { %231 = vst [vmem:[#allocation0 + $0x38] sm:$0xf] %v644_v0  ;;  %v647_v3 = vld [vmem:[%s1071_s0 + $0x10] sm:$0xf]  ;;  %v648_v4 = vld [vmem:[%s1071_s0 + $0xc] sm:$0xf] }
   0x3   :  { %235 = vst [vmem:[#allocation0 + $0x30] sm:$0xf] %v645_v1  ;;  %v649_v5 = vld [vmem:[%s1071_s0 + $0x8] sm:$0xf]  ;;  %v650_v6 = vld [vmem:[%s1071_s0 + $0x4] sm:$0xf] }
   0x4   :  { %239 = vst [vmem:[#allocation0 + $0x28] sm:$0xf] %v646_v2  ;;  %v256_v7 = vld [vmem:[%s1071_s0] sm:$0xf]  ;;  %v636_v8 = vld [vmem:[%s1071_s0 + $0x3c] sm:$0xf] }
   0x5   :  { %243 = vst [vmem:[#allocation0 + $0x20] sm:$0xf] %v647_v3  ;;  %v637_v9 = vld [vmem:[%s1071_s0 + $0x38] sm:$0xf]  ;;  %v638_v10 = vld [vmem:[%s1071_s0 + $0x34] sm:$0xf] }
   0x6   :  { %247 = vst [vmem:[#allocation0 + $0x18] sm:$0xf] %v648_v4  ;;  %v639_v11 = vld [vmem:[%s1071_s0 + $0x30] sm:$0xf]  ;;  %v640_v12 = vld [vmem:[%s1071_s0 + $0x2c] sm:$0xf] }
   0x7   :  { %251 = vst [vmem:[#allocation0 + $0x10] sm:$0xf] %v649_v5  ;;  %v641_v13 = vld [vmem:[%s1071_s0 + $0x28] sm:$0xf]  ;;  %v642_v14 = vld [vmem:[%s1071_s0 + $0x24] sm:$0xf] }
   0x8   :  { %255 = vst [vmem:[#allocation0 + $0x8] sm:$0xf] %v650_v6  ;;  %v643_v15 = vld [vmem:[%s1071_s0 + $0x20] sm:$0xf]  ;;  %v612_v17 = vld [vmem:[%s1071_s0 + $0x9c] sm:$0xf] }
   0x9   :  { %257 = vst [vmem:[#allocation0] sm:$0xf] %v256_v7  ;;  %v613_v18 = vld [vmem:[%s1071_s0 + $0x98] sm:$0xf]  ;;  %v614_v21 = vld [vmem:[%s1071_s0 + $0x94] sm:$0xf] }
   0xa   :  { %199 = vst [vmem:[#allocation0 + $0x78] sm:$0xf] %v636_v8  ;;  %v615_v22 = vld [vmem:[%s1071_s0 + $0x90] sm:$0xf]  ;;  %v616_v23 = vld [vmem:[%s1071_s0 + $0x8c] sm:$0xf] }
   0xb   :  { %203 = vst [vmem:[#allocation0 + $0x70] sm:$0xf] %v637_v9  ;;  %v617_v24 = vld [vmem:[%s1071_s0 + $0x88] sm:$0xf]  ;;  %v618_v25 = vld [vmem:[%s1071_s0 + $0x84] sm:$0xf] }
   0xc   :  { %207 = vst [vmem:[#allocation0 + $0x68] sm:$0xf] %v638_v10  ;;  %v330_v16 = vld [vmem:[#allocation0 + $0x3] ss:$8 sm:$0xf0]   ;;  %vm509_vm4 = vcmask 130112  }
   0xd   :  { %211 = vst [vmem:[#allocation0 + $0x60] sm:$0xf] %v639_v11  ;;  %v619_v26 = vld [vmem:[%s1071_s0 + $0x80] sm:$0xf]  ;;  %v604_v28 = vld [vmem:[%s1071_s0 + $0xbc] sm:$0xf] }
   0xe   :  { %215 = vst [vmem:[#allocation0 + $0x58] sm:$0xf] %v640_v12  ;;  %v605_v29 = vld [vmem:[%s1071_s0 + $0xb8] sm:$0xf]  ;;  %v606_v32 = vld [vmem:[%s1071_s0 + $0xb4] sm:$0xf] }
   0xf   :  { %219 = vst [vmem:[#allocation0 + $0x50] sm:$0xf] %v641_v13  ;;  %v607_v33 = vld [vmem:[%s1071_s0 + $0xb0] sm:$0xf]  ;;  %v608_v34 = vld [vmem:[%s1071_s0 + $0xac] sm:$0xf] }
  0x10   :  { %v328_v19 = vld [vmem:[#allocation0 + $0x3] ss:$8 sm:$0xf]   ;;  %223 = vst [vmem:[#allocation0 + $0x48] sm:$0xf] %v642_v14 }
  0x11   :  { %v332_v20 = vsel %vm260_vm0, %v330_v16, %v328_v19  ;;  %227 = vst [vmem:[#allocation0 + $0x40] sm:$0xf] %v643_v15  ;;  %v609_v35 = vld [vmem:[%s1071_s0 + $0xa8] sm:$0xf]  ;;  %v610_v36 = vld [vmem:[%s1071_s0 + $0xa4] sm:$0xf] }
  0x12   :  { %333 = vrot.lane.b32.xlu0 %v332_v20, %s682_s15  ;;  %103 = vst [vmem:[#allocation0 + $0x138] sm:$0xf] %v612_v17  ;;  %v611_v37 = vld [vmem:[%s1071_s0 + $0xa0] sm:$0xf]  ;;  %v620_v39 = vld [vmem:[%s1071_s0 + $0x7c] sm:$0xf] }
  0x13   :  { %107 = vst [vmem:[#allocation0 + $0x130] sm:$0xf] %v613_v18  ;;  %v621_v40 = vld [vmem:[%s1071_s0 + $0x78] sm:$0xf]  ;;  %v622_v43 = vld [vmem:[%s1071_s0 + $0x74] sm:$0xf] }
  0x14   :  { %111 = vst [vmem:[#allocation0 + $0x128] sm:$0xf] %v614_v21  ;;  %v351_v27 = vld [vmem:[#allocation0 + $0x43] ss:$8 sm:$0xf0]  }
  0x15   :  { %115 = vst [vmem:[#allocation0 + $0x120] sm:$0xf] %v615_v22  ;;  %v623_v44 = vld [vmem:[%s1071_s0 + $0x70] sm:$0xf]  ;;  %v624_v45 = vld [vmem:[%s1071_s0 + $0x6c] sm:$0xf] }
  0x16   :  { %119 = vst [vmem:[#allocation0 + $0x118] sm:$0xf] %v616_v23  ;;  %v625_v46 = vld [vmem:[%s1071_s0 + $0x68] sm:$0xf]  ;;  %v626_v47 = vld [vmem:[%s1071_s0 + $0x64] sm:$0xf] }
  0x17   :  { %123 = vst [vmem:[#allocation0 + $0x110] sm:$0xf] %v617_v24  ;;  %v627_v48 = vld [vmem:[%s1071_s0 + $0x60] sm:$0xf]  ;;  %v588_v50 = vld [vmem:[%s1071_s0 + $0xfc] sm:$0xf] }
  0x18   :  { %v349_v30 = vld [vmem:[#allocation0 + $0x43] ss:$8 sm:$0xf]   ;;  %127 = vst [vmem:[#allocation0 + $0x108] sm:$0xf] %v618_v25 }
  0x19   :  { %v353_v31 = vsel %vm260_vm0, %v351_v27, %v349_v30  ;;  %131 = vst [vmem:[#allocation0 + $0x100] sm:$0xf] %v619_v26  ;;  %v589_v51 = vld [vmem:[%s1071_s0 + $0xf8] sm:$0xf]  ;;  %v590_v54 = vld [vmem:[%s1071_s0 + $0xf4] sm:$0xf] }
  0x1a   :  { %354 = vrot.lane.b32.xlu1 %v353_v31, %s682_s15  ;;  %71 = vst [vmem:[#allocation0 + $0x178] sm:$0xf] %v604_v28  ;;  %v591_v55 = vld [vmem:[%s1071_s0 + $0xf0] sm:$0xf]  ;;  %v592_v56 = vld [vmem:[%s1071_s0 + $0xec] sm:$0xf] }
  0x1b   :  { %75 = vst [vmem:[#allocation0 + $0x170] sm:$0xf] %v605_v29  ;;  %v593_v57 = vld [vmem:[%s1071_s0 + $0xe8] sm:$0xf]  ;;  %v594_v58 = vld [vmem:[%s1071_s0 + $0xe4] sm:$0xf] }
  0x1c   :  { %79 = vst [vmem:[#allocation0 + $0x168] sm:$0xf] %v606_v32  ;;  %v340_v38 = vld [vmem:[#allocation0 + $0x103] ss:$8 sm:$0xf0]  }
  0x1d   :  { %83 = vst [vmem:[#allocation0 + $0x160] sm:$0xf] %v607_v33  ;;  %v595_v59 = vld [vmem:[%s1071_s0 + $0xe0] sm:$0xf]  ;;  %v628_v61 = vld [vmem:[%s1071_s0 + $0x5c] sm:$0xf] }
  0x1e   :  { %87 = vst [vmem:[#allocation0 + $0x158] sm:$0xf] %v608_v34  ;;  %v629_v62 = vld [vmem:[%s1071_s0 + $0x58] sm:$0xf]  ;;  %v630_v1 = vld [vmem:[%s1071_s0 + $0x54] sm:$0xf] }
  0x1f   :  { %91 = vst [vmem:[#allocation0 + $0x150] sm:$0xf] %v609_v35  ;;  %v631_v2 = vld [vmem:[%s1071_s0 + $0x50] sm:$0xf]  ;;  %v632_v3 = vld [vmem:[%s1071_s0 + $0x4c] sm:$0xf] }
  0x20   :  { %v338_v41 = vld [vmem:[#allocation0 + $0x103] ss:$8 sm:$0xf]   ;;  %95 = vst [vmem:[#allocation0 + $0x148] sm:$0xf] %v610_v36 }
  0x21   :  { %v342_v42 = vsel %vm260_vm0, %v340_v38, %v338_v41  ;;  %99 = vst [vmem:[#allocation0 + $0x140] sm:$0xf] %v611_v37  ;;  %v633_v4 = vld [vmem:[%s1071_s0 + $0x48] sm:$0xf]  ;;  %v634_v7 = vld [vmem:[%s1071_s0 + $0x44] sm:$0xf] }
  0x22   :  { %343 = vrot.lane.b32.xlu0 %v342_v42, %s682_s15  ;;  %135 = vst [vmem:[#allocation0 + $0xf8] sm:$0xf] %v620_v39  ;;  %v425_v5 = vld [vmem:[#allocation0 + $0x102] ss:$8 sm:$0xf]  }
  0x23   :  { %139 = vst [vmem:[#allocation0 + $0xf0] sm:$0xf] %v621_v40  ;;  %v427_v6 = vld [vmem:[#allocation0 + $0x102] ss:$8 sm:$0xf0]  }
  0x24   :  { %143 = vst [vmem:[#allocation0 + $0xe8] sm:$0xf] %v622_v43  ;;  %v362_v49 = vld [vmem:[#allocation0 + $0x143] ss:$8 sm:$0xf0]   ;;  %v429_v10 = vsel %vm260_vm0, %v427_v6, %v425_v5 }
  0x25   :  { %147 = vst [vmem:[#allocation0 + $0xe0] sm:$0xf] %v623_v44  ;;  %v635_v8 = vld [vmem:[%s1071_s0 + $0x40] sm:$0xf]  ;;  %v596_v11 = vld [vmem:[%s1071_s0 + $0xdc] sm:$0xf] }
  0x26   :  { %151 = vst [vmem:[#allocation0 + $0xd8] sm:$0xf] %v624_v45  ;;  %v597_v12 = vld [vmem:[%s1071_s0 + $0xd8] sm:$0xf]  ;;  %v598_v17 = vld [vmem:[%s1071_s0 + $0xd4] sm:$0xf] }
  0x27   :  { %155 = vst [vmem:[#allocation0 + $0xd0] sm:$0xf] %v625_v46  ;;  %v436_v15 = vld [vmem:[#allocation0 + $0x42] ss:$8 sm:$0xf]  }
  0x28   :  { %v360_v52 = vld [vmem:[#allocation0 + $0x143] ss:$8 sm:$0xf]   ;;  %159 = vst [vmem:[#allocation0 + $0xc8] sm:$0xf] %v626_v47 }
  0x29   :  { %v364_v53 = vsel %vm260_vm0, %v362_v49, %v360_v52  ;;  %163 = vst [vmem:[#allocation0 + $0xc0] sm:$0xf] %v627_v48  ;;  %v438_v16 = vld [vmem:[#allocation0 + $0x42] ss:$8 sm:$0xf0]  }
  0x2a   :  { %365 = vrot.lane.b32.xlu1 %v364_v53, %s682_s15  ;;  %7 = vst [vmem:[#allocation0 + $0x1f8] sm:$0xf] %v588_v50  ;;  %v599_v18 = vld [vmem:[%s1071_s0 + $0xd0] sm:$0xf]  ;;  %v600_v19 = vld [vmem:[%s1071_s0 + $0xcc] sm:$0xf]  ;;  %v440_v23 = vsel %vm260_vm0, %v438_v16, %v436_v15 }
  0x2b   :  { %11 = vst [vmem:[#allocation0 + $0x1f0] sm:$0xf] %v589_v51  ;;  %v601_v20 = vld [vmem:[%s1071_s0 + $0xc8] sm:$0xf]  ;;  %v602_v24 = vld [vmem:[%s1071_s0 + $0xc4] sm:$0xf] }
  0x2c   :  { %15 = vst [vmem:[#allocation0 + $0x1e8] sm:$0xf] %v590_v54  ;;  %v395_v60 = vld [vmem:[#allocation0 + $0xc3] ss:$8 sm:$0xf0]  }
  0x2d   :  { %19 = vst [vmem:[#allocation0 + $0x1e0] sm:$0xf] %v591_v55  ;;  %v603_v25 = vld [vmem:[%s1071_s0 + $0xc0] sm:$0xf]  ;;  %s684_s0 = smov 8  }
  0x2e   :  { %23 = vst [vmem:[#allocation0 + $0x1d8] sm:$0xf] %v592_v56  ;;  %v415_v39 = vld [vmem:[#allocation0 + $0x2] ss:$8 sm:$0xf]  }
  0x2f   :  { %27 = vst [vmem:[#allocation0 + $0x1d0] sm:$0xf] %v593_v57  ;;  %v417_v40 = vld [vmem:[#allocation0 + $0x2] ss:$8 sm:$0xf0]  }
  0x30   :  { %v393_v63 = vld [vmem:[#allocation0 + $0xc3] ss:$8 sm:$0xf]   ;;  %31 = vst [vmem:[#allocation0 + $0x1c8] sm:$0xf] %v594_v58  ;;  %v419_v46 = vsel %vm260_vm0, %v417_v40, %v415_v39 }
  0x31   :  { %v397_v0 = vsel %vm260_vm0, %v395_v60, %v393_v63  ;;  %35 = vst [vmem:[#allocation0 + $0x1c0] sm:$0xf] %v595_v59  ;;  %v523_v41 = vld [vmem:[#allocation0 + $0x41] ss:$8 sm:$0xf]  }
  0x32   :  { %398 = vrot.lane.b32.xlu0 %v397_v0, %s682_s15  ;;  %167 = vst [vmem:[#allocation0 + $0xb8] sm:$0xf] %v628_v61  ;;  %v525_v42 = vld [vmem:[#allocation0 + $0x41] ss:$8 sm:$0xf0]  }
  0x33   :  { %171 = vst [vmem:[#allocation0 + $0xb0] sm:$0xf] %v629_v62  ;;  %v502_v43 = vld [vmem:[#allocation0 + $0x1] ss:$8 sm:$0xf]   ;;  %v527_v45 = vsel %vm260_vm0, %v525_v42, %v523_v41 }
  0x34   :  { %175 = vst [vmem:[#allocation0 + $0xa8] sm:$0xf] %v630_v1  ;;  %v406_v9 = vld [vmem:[#allocation0 + $0x1c3] ss:$8 sm:$0xf0]  }
  0x35   :  { %179 = vst [vmem:[#allocation0 + $0xa0] sm:$0xf] %v631_v2  ;;  %v493_v31 = vld [vmem:[#allocation0 + $0x1c2] ss:$8 sm:$0xf0]  }
  0x36   :  { %183 = vst [vmem:[#allocation0 + $0x98] sm:$0xf] %v632_v3  ;;  %v504_v44 = vld [vmem:[#allocation0 + $0x1] ss:$8 sm:$0xf0]  }
  0x37   :  { %187 = vst [vmem:[#allocation0 + $0x90] sm:$0xf] %v633_v4  ;;  %v506_v47 = vsel %vm260_vm0, %v504_v44, %v502_v43  ;;  %v447_v48 = vld [vmem:[#allocation0 + $0x142] ss:$8 sm:$0xf]  }
  0x38   :  { %v404_v13 = vld [vmem:[#allocation0 + $0x1c3] ss:$8 sm:$0xf]   ;;  %191 = vst [vmem:[#allocation0 + $0x88] sm:$0xf] %v634_v7 }
  0x39   :  { %v408_v14 = vsel %vm260_vm0, %v406_v9, %v404_v13  ;;  %195 = vst [vmem:[#allocation0 + $0x80] sm:$0xf] %v635_v8  ;;  %v491_v30 = vld [vmem:[#allocation0 + $0x1c2] ss:$8 sm:$0xf]  }
  0x3a   :  { %409 = vrot.lane.b32.xlu1 %v408_v14, %s682_s15  ;;  %430 = vrot.lane.b32.xlu0 %v429_v10, %s683_s9  ;;  %39 = vst [vmem:[#allocation0 + $0x1b8] sm:$0xf] %v596_v11  ;;  %v495_v34 = vsel %vm260_vm0, %v493_v31, %v491_v30  ;;  %v449_v49 = vld [vmem:[#allocation0 + $0x142] ss:$8 sm:$0xf0]  }
  0x3b   :  { %43 = vst [vmem:[#allocation0 + $0x1b0] sm:$0xf] %v597_v12  ;;  %v534_v52 = vld [vmem:[#allocation0 + $0x141] ss:$8 sm:$0xf]   ;;  %v451_v55 = vsel %vm260_vm0, %v449_v49, %v447_v48 }
  0x3c   :  { %v373_v21 = vld [vmem:[#allocation0 + $0x83] ss:$8 sm:$0xf0]   ;;  %47 = vst [vmem:[#allocation0 + $0x1a8] sm:$0xf] %v598_v17 }
  0x3d   :  { %v460_v22 = vld [vmem:[#allocation0 + $0x82] ss:$8 sm:$0xf0]   ;;  %51 = vst [vmem:[#allocation0 + $0x1a0] sm:$0xf] %v599_v18 }
  0x3e   :  { %55 = vst [vmem:[#allocation0 + $0x198] sm:$0xf] %v600_v19  ;;  %v536_v53 = vld [vmem:[#allocation0 + $0x141] ss:$8 sm:$0xf0]  }
  0x3f   :  { %59 = vst [vmem:[#allocation0 + $0x190] sm:$0xf] %v601_v20  ;;  %v538_v56 = vsel %vm260_vm0, %v536_v53, %v534_v52  ;;  %v480_v57 = vld [vmem:[#allocation0 + $0xc2] ss:$8 sm:$0xf]  }
  0x40   :  { %v371_v26 = vld [vmem:[#allocation0 + $0x83] ss:$8 sm:$0xf]   ;;  %v458_v27 = vld [vmem:[#allocation0 + $0x82] ss:$8 sm:$0xf]  }
  0x41   :  { %v375_v28 = vsel %vm260_vm0, %v373_v21, %v371_v26  ;;  %v462_v29 = vsel %vm260_vm0, %v460_v22, %v458_v27  ;;  %63 = vst [vmem:[#allocation0 + $0x188] sm:$0xf] %v602_v24  ;;  %v482_v58 = vld [vmem:[#allocation0 + $0xc2] ss:$8 sm:$0xf0]  }
  0x42   :  { %376 = vrot.lane.b32.xlu2 %v375_v28, %s682_s15  ;;  %441 = vrot.lane.b32.xlu1 %v440_v23, %s683_s9  ;;  %67 = vst [vmem:[#allocation0 + $0x180] sm:$0xf] %v603_v25  ;;  %v567_v59 = vld [vmem:[#allocation0 + $0xc1] ss:$8 sm:$0xf]   ;;  %v484_v61 = vsel %vm260_vm0, %v482_v58, %v480_v57 }
  0x43   :  { %463 = vrot.lane.b32.xlu0 %v462_v29, %s683_s9  ;;  %v569_v60 = vld [vmem:[#allocation0 + $0xc1] ss:$8 sm:$0xf0]   ;;  %v258_v63 = vld [vmem:[#allocation0] ss:$8 sm:$0xf]  }
  0x44   :  { %v384_v32 = vld [vmem:[#allocation0 + $0x183] ss:$8 sm:$0xf0]   ;;  %v471_v33 = vld [vmem:[#allocation0 + $0x182] ss:$8 sm:$0xf0]   ;;  %v571_v62 = vsel %vm260_vm0, %v569_v60, %v567_v59 }
  0x45   :  { %v558_v51 = vld [vmem:[#allocation0 + $0x181] ss:$8 sm:$0xf0]   ;;  %v259_v0 = vld [vmem:[#allocation0] ss:$8 sm:$0xf0]  }
  0x46   :  { %v512_v1 = vld [vmem:[#allocation0 + $0x101] ss:$8 sm:$0xf]   ;;  %v261_v2 = vsel %vm260_vm0, %v259_v0, %v258_v63  ;;  %v265_v5 = vld [vmem:[#allocation0 + $0x40] ss:$8 sm:$0xf]  }
  0x47   :  { %v514_v3 = vld [vmem:[#allocation0 + $0x101] ss:$8 sm:$0xf0]   ;;  %263 = vst.msk [vmem:[%s1072_s1] sm:$0xff] %vm262_vm1, %v261_v2  }
  0x48   :  { %v516_v4 = vsel %vm260_vm0, %v514_v3, %v512_v1  ;;  %v267_v6 = vld [vmem:[#allocation0 + $0x40] ss:$8 sm:$0xf0]   ;;  %v545_v7 = vld [vmem:[#allocation0 + $0x81] ss:$8 sm:$0xf]  }
  0x49   :  { %v382_v35 = vld [vmem:[#allocation0 + $0x183] ss:$8 sm:$0xf]   ;;  %v469_v36 = vld [vmem:[#allocation0 + $0x182] ss:$8 sm:$0xf]   ;;  %v269_v8 = vsel %vm260_vm0, %v267_v6, %v265_v5 }
  0x4a   :  { %v386_v37 = vsel %vm260_vm0, %v384_v32, %v382_v35  ;;  %v473_v38 = vsel %vm260_vm0, %v471_v33, %v469_v36  ;;  %v556_v50 = vld [vmem:[#allocation0 + $0x181] ss:$8 sm:$0xf]   ;;  %651 = vst.msk [vmem:[%s1072_s1 + $0x8] sm:$0xff] %vm262_vm1, %v269_v8  }
  0x4b   :  { %496 = vrot.lane.b32.xlu0 %v495_v34, %s683_s9  ;;  %387 = vrot.lane.b32.xlu2 %v386_v37, %s682_s15  ;;  %v560_v54 = vsel %vm260_vm0, %v558_v51, %v556_v50  ;;  %v547_v9 = vld [vmem:[#allocation0 + $0x81] ss:$8 sm:$0xf0]   ;;  %v274_v14 = vld [vmem:[#allocation0 + $0x80] ss:$8 sm:$0xf]  }
  0x4c   :  { %474 = vrot.lane.b32.xlu1 %v473_v38, %s683_s9  ;;  %v549_v10 = vsel %vm260_vm0, %v547_v9, %v545_v7  ;;  %v578_v11 = vld [vmem:[#allocation0 + $0x1c1] ss:$8 sm:$0xf]   ;;  %v276_v15 = vld [vmem:[#allocation0 + $0x80] ss:$8 sm:$0xf0]  }
  0x4d   :  { %v580_v12 = vld [vmem:[#allocation0 + $0x1c1] ss:$8 sm:$0xf0]   ;;  %v278_v16 = vsel %vm260_vm0, %v276_v15, %v274_v14  ;;  %v292_v17 = vld [vmem:[#allocation0 + $0x100] ss:$8 sm:$0xf]  }
  0x4e   :  { %v582_v13 = vsel %vm260_vm0, %v580_v12, %v578_v11  ;;  %v294_v18 = vld [vmem:[#allocation0 + $0x100] ss:$8 sm:$0xf0]   ;;  %652 = vst.msk [vmem:[%s1072_s1 + $0x10] sm:$0xff] %vm262_vm1, %v278_v16  }
  0x4f   :  { %v296_v19 = vsel %vm260_vm0, %v294_v18, %v292_v17  ;;  %v301_v20 = vld [vmem:[#allocation0 + $0x140] ss:$8 sm:$0xf]  }
  0x50   :  { %654 = vst.msk [vmem:[%s1072_s1 + $0x20] sm:$0xff] %vm262_vm1, %v296_v19   ;;  %v303_v21 = vld [vmem:[#allocation0 + $0x140] ss:$8 sm:$0xf0]  }
  0x51   :  { %v305_v22 = vsel %vm260_vm0, %v303_v21, %v301_v20  ;;  %v310_v23 = vld [vmem:[#allocation0 + $0x180] ss:$8 sm:$0xf]  }
  0x52   :  { %655 = vst.msk [vmem:[%s1072_s1 + $0x28] sm:$0xff] %vm262_vm1, %v305_v22   ;;  %v312_v25 = vld [vmem:[#allocation0 + $0x180] ss:$8 sm:$0xf0]  }
  0x53   :  { %528 = vrot.lane.b32.xlu0 %v527_v45, %s684_s0  ;;  %420 = vrot.lane.b32.xlu2 %v419_v46, %s683_s9  ;;  %v314_v26 = vsel %vm260_vm0, %v312_v25, %v310_v23  ;;  %v283_v27 = vld [vmem:[#allocation0 + $0xc0] ss:$8 sm:$0xf]  }
  0x54   :  { %507 = vrot.lane.b32.xlu1 %v506_v47, %s684_s0  ;;  %656 = vst.msk [vmem:[%s1072_s1 + $0x30] sm:$0xff] %vm262_vm1, %v314_v26   ;;  %v285_v28 = vld [vmem:[#allocation0 + $0xc0] ss:$8 sm:$0xf0]  }
  0x55   :  { %v287_v29 = vsel %vm260_vm0, %v285_v28, %v283_v27  ;;  %v319_v31 = vld [vmem:[#allocation0 + $0x1c0] ss:$8 sm:$0xf]  }
  0x56   :  { %653 = vst.msk [vmem:[%s1072_s1 + $0x18] sm:$0xff] %vm262_vm1, %v287_v29   ;;  %v321_v32 = vld [vmem:[#allocation0 + $0x1c0] ss:$8 sm:$0xf0]  }
  0x57   :  { %v323_v33 = vsel %vm260_vm0, %v321_v32, %v319_v31 }
  0x58   :  { %657 = vst.msk [vmem:[%s1072_s1 + $0x38] sm:$0xff] %vm262_vm1, %v323_v33  }
  0x5b   :  { %561 = vrot.lane.b32.xlu0 %v560_v54, %s684_s0  ;;  %452 = vrot.lane.b32.xlu2 %v451_v55, %s683_s9 }
  0x5c   :  { %539 = vrot.lane.b32.xlu1 %v538_v56, %s684_s0 }
  0x63   :  { %485 = vrot.lane.b32.xlu2 %v484_v61, %s683_s9 }
  0x64   :  { %572 = vrot.lane.b32.xlu1 %v571_v62, %s684_s0 }
  0x6b   :  { %517 = vrot.lane.b32.xlu2 %v516_v4, %s684_s0 }
  0x73   :  { %550 = vrot.lane.b32.xlu2 %v549_v10, %s684_s0 }
  0x7b   :  { %583 = vrot.lane.b32.xlu2 %v582_v13, %s684_s0 }
  0x84   :  { %v334_v24 = vpop.permute.xlu0 %333  }
  0x85   :  { %336 = vst.msk [vmem:[%s1072_s1] sm:$0xff] %vm335_vm2, %v334_v24  }
  0x8c   :  { %v355_v30 = vpop.permute.xlu1 %354  }
  0x8d   :  { %659 = vst.msk [vmem:[%s1072_s1 + $0x8] sm:$0xff] %vm335_vm2, %v355_v30  }
  0x94   :  { %v344_v34 = vpop.permute.xlu0 %343  }
  0x95   :  { %658 = vst.msk [vmem:[%s1072_s1 + $0x20] sm:$0xff] %vm335_vm2, %v344_v34  }
  0x9c   :  { %v377_v35 = vpop.permute.xlu2 %376   ;;  %v366_v36 = vpop.permute.xlu1 %365  }
  0x9d   :  { %661 = vst.msk [vmem:[%s1072_s1 + $0x10] sm:$0xff] %vm335_vm2, %v377_v35  }
  0x9e   :  { %660 = vst.msk [vmem:[%s1072_s1 + $0x28] sm:$0xff] %vm335_vm2, %v366_v36  }
  0xa4   :  { %v399_v37 = vpop.permute.xlu0 %398  }
  0xa5   :  { %663 = vst.msk [vmem:[%s1072_s1 + $0x18] sm:$0xff] %vm335_vm2, %v399_v37   ;;  %v388_v38 = vpop.permute.xlu2 %387  }
  0xa6   :  { %662 = vst.msk [vmem:[%s1072_s1 + $0x30] sm:$0xff] %vm335_vm2, %v388_v38  }
  0xac   :  { %v410_v39 = vpop.permute.xlu1 %409   ;;  %v431_v40 = vpop.permute.xlu0 %430  }
  0xad   :  { %664 = vst.msk [vmem:[%s1072_s1 + $0x38] sm:$0xff] %vm335_vm2, %v410_v39   ;;  %v421_v41 = vpop.permute.xlu2 %420  }
  0xae   :  { %665 = vst.msk [vmem:[%s1072_s1 + $0x20] sm:$0xff] %vm422_vm3, %v431_v40  }
  0xaf   :  { %423 = vst.msk [vmem:[%s1072_s1] sm:$0xff] %vm422_vm3, %v421_v41  }
  0xb4   :  { %v442_v42 = vpop.permute.xlu1 %441  }
  0xb5   :  { %666 = vst.msk [vmem:[%s1072_s1 + $0x8] sm:$0xff] %vm422_vm3, %v442_v42   ;;  %v464_v43 = vpop.permute.xlu0 %463   ;;  %v453_v44 = vpop.permute.xlu2 %452  }
  0xb6   :  { %668 = vst.msk [vmem:[%s1072_s1 + $0x10] sm:$0xff] %vm422_vm3, %v464_v43  }
  0xb7   :  { %667 = vst.msk [vmem:[%s1072_s1 + $0x28] sm:$0xff] %vm422_vm3, %v453_v44  }
  0xbd   :  { %v497_v45 = vpop.permute.xlu0 %496   ;;  %v486_v46 = vpop.permute.xlu2 %485  }
  0xbe   :  { %v475_v47 = vpop.permute.xlu1 %474   ;;  %671 = vst.msk [vmem:[%s1072_s1 + $0x38] sm:$0xff] %vm422_vm3, %v497_v45  }
  0xbf   :  { %670 = vst.msk [vmem:[%s1072_s1 + $0x18] sm:$0xff] %vm422_vm3, %v486_v46  }
  0xc0   :  { %669 = vst.msk [vmem:[%s1072_s1 + $0x30] sm:$0xff] %vm422_vm3, %v475_v47  }
  0xc5   :  { %v529_v48 = vpop.permute.xlu0 %528   ;;  %v518_v49 = vpop.permute.xlu2 %517  }
  0xc6   :  { %v508_v50 = vpop.permute.xlu1 %507   ;;  %673 = vst.msk [vmem:[%s1072_s1 + $0x8] sm:$0xff] %vm509_vm4, %v529_v48  }
  0xc7   :  { %672 = vst.msk [vmem:[%s1072_s1 + $0x20] sm:$0xff] %vm509_vm4, %v518_v49  }
  0xc8   :  { %510 = vst.msk [vmem:[%s1072_s1] sm:$0xff] %vm509_vm4, %v508_v50  }
  0xcd   :  { %v562_v51 = vpop.permute.xlu0 %561   ;;  %v551_v52 = vpop.permute.xlu2 %550  }
  0xce   :  { %v540_v53 = vpop.permute.xlu1 %539   ;;  %676 = vst.msk [vmem:[%s1072_s1 + $0x30] sm:$0xff] %vm509_vm4, %v562_v51  }
  0xcf   :  { %675 = vst.msk [vmem:[%s1072_s1 + $0x10] sm:$0xff] %vm509_vm4, %v551_v52  }
  0xd0   :  { %674 = vst.msk [vmem:[%s1072_s1 + $0x28] sm:$0xff] %vm509_vm4, %v540_v53  }
  0xd5   :  { %v584_v54 = vpop.permute.xlu2 %583  }
  0xd6   :  { %v573_v55 = vpop.permute.xlu1 %572   ;;  %678 = vst.msk [vmem:[%s1072_s1 + $0x38] sm:$0xff] %vm509_vm4, %v584_v54  }
  0xd7   :  { %677 = vst.msk [vmem:[%s1072_s1 + $0x18] sm:$0xff] %vm509_vm4, %v573_v55  }

// kernel: stage_inner.1
= control target key start
LH: loop header
LB: loop body
LE: loop exit
PB: predicated region body
PF: predicated region fallthrough
CT: control target
= control target key end

     0   :  { %s2682_s17 = smov 0   ;;  %s2684_s18 = smov 0   ;;  %s3094_s0 = inlined_call_operand.vmem [shape: f32[16,32], index: 0, kind: input, shape index: {}, may-alias: {0,11}]   ;;  %s3095_s1 = inlined_call_operand.vmem [shape: f32[2,32,8], index: 1, kind: input, shape index: {}]   ;;  %s3096_s2 = inlined_call_operand.vmem [shape: f32[2,32,8], index: 2, kind: input, shape index: {}]   ;;  %s3097_s3 = inlined_call_operand.vmem [shape: f32[2,32,32], index: 3, kind: input, shape index: {}]   ;;  %s3098_s4 = inlined_call_operand.vmem [shape: f32[2,1,32], index: 4, kind: input, shape index: {}]   ;;  %s3099_s5 = inlined_call_operand.vmem [shape: f32[2,32,128], index: 5, kind: input, shape index: {}]   ;;  %s3100_s6 = inlined_call_operand.vmem [shape: f32[2,1,128], index: 6, kind: input, shape index: {}]   ;;  %s3101_s7 = inlined_call_operand.vmem [shape: f32[2,32,32], index: 7, kind: input, shape index: {}]   ;;  %s3102_s8 = inlined_call_operand.vmem [shape: f32[2,1,32], index: 8, kind: input, shape index: {}]   ;;  %s3103_s9 = inlined_call_operand.vmem [shape: f32[2,32,128], index: 9, kind: input, shape index: {}]   ;;  %s3104_s10 = inlined_call_operand.vmem [shape: f32[2,64,32], index: 10, kind: input, shape index: {}]   ;;  %s3105_s11 = inlined_call_operand.vmem [shape: f32[16,32], index: 11, kind: output, shape index: {}, may-alias: {0,11}]  }
   0x1   :  { %3109 = sst [smem:[#allocation7_spill]] %s3094_s0  ;;  %s2686_s19 = smov 0  }
   0x2   :  { %3110 = sst [smem:[#allocation8_spill]] %s3095_s1  ;;  %s2688_s20 = smov 0  }
   0x3   :  { %3111 = sst [smem:[#allocation9_spill]] %s3096_s2  ;;  %s2690_s21 = smov 0  }
   0x4   :  { %3112 = sst [smem:[#allocation10_spill]] %s3097_s3 }
   0x5   :  { %3113 = sst [smem:[#allocation11_spill]] %s3099_s5 }
   0x6 LB: > { %3114 = sst [smem:[#allocation2_spill]] %s2601_s19  ;;  %s30_s22 = sadd.s32 1, %s2601_s19  ;;  %s2609_s21 = sphi %s2690_s21, %s21_s21   ;;  %s2605_s20 = sphi %s2688_s20, %s3130_s20   ;;  %s2601_s19 = sphi %s2686_s19, %s3129_s19   ;;  %s2597_s18 = sphi %s2684_s18, %s3128_s18   ;;  %s2593_s17 = sphi %s2682_s17, %s3127_s17  }
   0x7   : > { %3115 = sst [smem:[#allocation3_spill]] %s2605_s20  ;;  %s33_s23 = sadd.s32 1, %s2605_s20 }
   0x8   : > { %3116 = sst [smem:[#allocation4_spill]] %s2609_s21  ;;  %p31_p0 = scmp.ge.s32.totalorder %s30_s22, 2 }
   0x9   : > { %p2462_p1 = scmp.ge.s32.totalorder %s2609_s21, 1  ;;  %p442_p2 = scmp.lt.s32.totalorder %s2609_s21, 5 }
   0xa   : > { %s3132_s22 = smov (%p31_p0, %s30_s22), 0  ;;  %s3134_s23 = smov (!%p31_p0, %s33_s23), %s2605_s20 }
   0xb   : > { %3117 = sst [smem:[#allocation5_spill]] %s3132_s22  ;;  %p443_p3 = pnand %p2462_p1, %p442_p2 }
   0xc   : > { %p35_p4 = scmp.ge.s32.totalorder %s3134_s23, 2  ;;  %p524_p5 = scmp.lt.s32.totalorder (!%p443_p3), %s2597_s18, 1 }
   0xd   : > { %446 = sbr.rel (%p443_p3) target bundleno = 2121 (0x849), region = 64  ;;  %p543_p6 = scmp.lt.s32.totalorder (!%p443_p3), %s2593_s17, 1 }
   0xe   : > { %s3136_s23 = smov (%p35_p4, %s3134_s23), 0  ;;  %s3119_s0 = sld [smem:[#allocation7_spill]] (!%p443_p3) }
   0xf   : > { %3118 = sst [smem:[#allocation6_spill]] %s3136_s23  ;;  %p2479_p7 = scmp.ne.s32.totalorder (!%p443_p3), %s2593_s17, 0 }
  0x10   : > { %s3120_s1 = sld [smem:[#allocation8_spill]] (!%p443_p3) }
  0x11   : > { %s3121_s2 = sld [smem:[#allocation9_spill]] (!%p443_p3) }
  0x12   : > { %s3138_s18 = smov (!%p524_p5, %s2597_s18), 1  ;;  %s3122_s3 = sld [smem:[#allocation10_spill]] }
  0x13   : > { %s2716_s24 = scalar_select %p543_p6, %s2593_s17, 1 }
  0x14   : > { %s2463_s25 = sshll.u32 %s3138_s18, 3  ;;  %s2483_s26 = sshll.u32 %s3138_s18, 5 }
  0x15   : > { %s527_s29 = scalar_lea.vmem %s3119_s0, %s2463_s25  ;;  %s2486_s28 = sshll.u32 %s2716_s24, 5 }
  0x16   : > { %s2724_s13 = scalar_lea.vmem %s3120_s1, %s2483_s26  ;;  %s3123_s5 = sld [smem:[#allocation11_spill]] }
  0x17   : > { %s2729_s16 = scalar_lea.vmem %s3121_s2, %s2483_s26  ;;  %s2753_s22 = scalar_lea.vmem %s3101_s7, %s2486_s28 }
  0x18   : > { %s2734_s20 = scalar_lea.vmem %s3122_s3, %s2483_s26  ;;  %s561_s19 = scalar_lea.vmem %s3102_s8, %s2716_s24 }
  0x19   : > { %s2762_s3 = scalar_lea.vmem %s3103_s9, %s2486_s28  ;;  %s2489_s0 = sshll.u32 %s2716_s24, 6 }
  0x1a   : > { %s2768_s1 = scalar_lea.vmem %s3104_s10, %s2489_s0  ;;  %s2773_s2 = scalar_lea.vmem %s3105_s11, %s2463_s25 }
  0x1b   : > { %579 = sbr.rel (%p2479_p7) target bundleno = 34 (0x22), region = 68 }
  0x1c   : > { %s2744_s30 = scalar_lea.vmem %s3123_s5, %s2486_s28 }
  0x20   : > { %v580_v0 = vld [vmem:[%s527_s29] sm:$0xff]  ;;  %vm581_vm0 = vcmask 261120  }
  0x21   : > { %582 = vst.msk [vmem:[%s2773_s2] sm:$0xff] %vm581_vm0, %v580_v0 }
  0x22 PF: > { %vm586_vm1 = vcmask 261120   ;;  %v2611_v4 = vmov 32.0   ;;  %v617_v6 = vld [vmem:[%s2744_s30 + $0x18] sm:$0xff]  ;;  %v616_v9 = vld [vmem:[%s2744_s30 + $0x10] sm:$0xff]  ;;  %v615_v12 = vld [vmem:[%s2744_s30 + $0x8] sm:$0xff]  ;;  %s2612_s5 = smov 80   ;;  %s3124_s29 = scalar_lea.vmem %s3098_s4, %s2716_s24 }
  0x23   : > { %2544 = vrcp.f32 %v2611_v4  ;;  %v637_v7 = vand.u32 4294901760, %v617_v6  ;;  %v639_v11 = vand.u32 4294901760, %v616_v9  ;;  %v641_v15 = vand.u32 4294901760, %v615_v12  ;;  %v614_v17 = vld [vmem:[%s2744_s30] sm:$0xff]  ;;  %v2791_v41 = vld [vmem:[%s2729_s16 + $0x8] sm:$0xff]  ;;  %v827_v42 = vld [vmem:[%s2729_s16 + $0x18] sm:$0xff]  ;;  %s3125_s30 = scalar_lea.vmem %s3100_s6, %s2716_s24 }
  0x24   : > { %v643_v21 = vand.u32 4294901760, %v614_v17  ;;  %894 = vrot.lane.b32.xlu2 %v2791_v41, %s2612_s5  ;;  %898 = vrot.lane.b32.xlu1 %v827_v42, %s2612_s5  ;;  %v824_v46 = vld [vmem:[%s2729_s16] sm:$0xff]  ;;  %v826_v47 = vld [vmem:[%s2729_s16 + $0x10] sm:$0xff]  ;;  %s2613_s16 = smov 64   ;;  %s2614_s14 = smov 120   ;;  %vm944_vm6 = vcmask 64512  }
  0x25   : > { %v667_v10 = vsub.f32 %v617_v6, %v637_v7  ;;  %738 = vmatpush.msra.mxu3 %v637_v7  ;;  %638 = vmatpush.msra.mxu0 %v637_v7  ;;  %v673_v14 = vsub.f32 %v616_v9, %v639_v11  ;;  %v679_v20 = vsub.f32 %v615_v12, %v641_v15  ;;  %v2541_v48 = vld [vmem:[%s3124_s29] ss:$0 sm:$0xff]  ;;  %v2805_v58 = vld [vmem:[%s2724_s13 + $0x18] sm:$0xff]  ;;  %v2810_v59 = vld [vmem:[%s2724_s13 + $0x10] sm:$0xff]  ;;  %s2615_s15 = smov 112   ;;  %s2616_s23 = smov 32  }
  0x26   : > { %v685_v25 = vsub.f32 %v614_v17, %v643_v21  ;;  %v2542_v60 = vld [vmem:[%s3125_s30] ss:$0 sm:$0xff]  ;;  %v2824_v12 = vld [vmem:[%s2724_s13 + $0x8] sm:$0xff]  ;;  %s2617_s26 = smov 104   ;;  %s2620_s18 = smov 16   ;;  %vm1596_vm7 = vcmask 130048  }
  0x27   : > { %v668_v13 = vand.u32 4294901760, %v667_v10  ;;  %709 = vmatpush.msra.mxu2 %v667_v10  ;;  %740 = vmatpush.msra.mxu3 %v639_v11  ;;  %v674_v19 = vand.u32 4294901760, %v673_v14  ;;  %v680_v24 = vand.u32 4294901760, %v679_v20  ;;  %s2621_s0 = smov 24   ;;  %vm1598_vm8 = vcmask 195584  }
  0x28   : > { %v2778_v1 = vld [vmem:[%s2773_s2] sm:$0xff]  ;;  %640 = vmatpush.msra.mxu0 %v639_v11  ;;  %v686_v29 = vand.u32 4294901760, %v685_v25  ;;  %vm2040_vm0 = vcmask 523264  }
  0x29   : > { %v585_v2 = vmul.f32 %v2778_v1, %v2778_v1  ;;  %v2545_v5 = vpop.eup %2544  ;;  %v669_v18 = vsub.f32 %v667_v10, %v668_v13  ;;  %712 = vmatpush.msra.mxu2 %v673_v14  ;;  %742 = vmatpush.msra.mxu3 %v641_v15  ;;  %v675_v23 = vsub.f32 %v673_v14, %v674_v19 }
  0x2a   : > { %v591_v8 = vmul.f32 32.0, %v2545_v5  ;;  %642 = vmatpush.msra.mxu0 %v641_v15  ;;  %v681_v28 = vsub.f32 %v679_v20, %v680_v24  ;;  %v687_v31 = vsub.f32 %v685_v25, %v686_v29  ;;  %vm595_vm2 = vweird.f32 %v2545_v5 }
  0x2b   : > { %v587_v3 = vsel %vm586_vm1, %v585_v2, 0.0  ;;  %v670_v22 = vand.u32 4294901760, %v669_v18  ;;  %715 = vmatpush.msra.mxu2 %v679_v20  ;;  %744 = vmatpush.msra.mxu3 %v643_v21  ;;  %v676_v27 = vand.u32 4294901760, %v675_v23 }
  0x2c   : > { %588 = vadd.xlane.f32.xlu0 %v587_v3  ;;  %v592_v16 = vsub.f32 1.0, %v591_v8  ;;  %644 = vmatpush.msra.mxu0 %v643_v21  ;;  %v682_v30 = vand.u32 4294901760, %v681_v28  ;;  %v688_v33 = vand.u32 4294901760, %v687_v31 }
  0x2d   : > { %671 = vmatpush.msra.mxu1 %v670_v22  ;;  %718 = vmatpush.msra.mxu2 %v685_v25  ;;  %v820_v25 = vld [vmem:[%s2724_s13] sm:$0xff]  ;;  %s2618_s13 = smov 96  }
  0x2e   : > { %v593_v26 = vmul.f32 %v2545_v5, %v592_v16  ;;  %767 = vmatpush.msrb.mxu0 %v668_v13  ;;  %892 = vrot.lane.b32.xlu2 %v824_v46, %s2612_s5 }
  0x2f   : > { %677 = vmatpush.msra.mxu1 %v676_v27  ;;  %896 = vrot.lane.b32.xlu1 %v826_v47, %s2612_s5 }
  0x30   : > { %v594_v32 = vadd.f32 %v2545_v5, %v593_v26  ;;  %771 = vmatpush.msrb.mxu0 %v674_v19 }
  0x31   : > { %683 = vmatpush.msra.mxu1 %v682_v30 }
  0x32   : > { %775 = vmatpush.msrb.mxu0 %v680_v24  ;;  %v2787_v34 = vsel %vm595_vm2, %v2545_v5, %v594_v32 }
  0x33   : > { %689 = vmatpush.msra.mxu1 %v688_v33 }
  0x34   : > { %779 = vmatpush.msrb.mxu0 %v686_v29 }
  0x35   : > { %798 = vmatpush.msrb.mxu1 %v637_v7 }
  0x37   : > { %800 = vmatpush.msrb.mxu1 %v639_v11  ;;  %882 = vrot.lane.b32.xlu1 %v2805_v58, %s2613_s16 }
  0x39   : > { %802 = vmatpush.msrb.mxu1 %v641_v15 }
  0x3b   : > { %804 = vmatpush.msrb.mxu1 %v643_v21 }
  0x3f   : > { %880 = vrot.lane.b32.xlu1 %v2810_v59, %s2613_s16 }
  0x7e   : > { %v895_v5 = vpop.permute.xlu2 %894 }
  0x88   : > { %v893_v11 = vpop.permute.xlu2 %892 }
  0x96   : > { %v899_v14 = vpop.permute.xlu1 %898 }
  0x9f   : > { %v589_v35 = vpop.xlane.xlu0 %588 }
  0xa0   : > { %v597_v36 = vmul.f32 %v2787_v34, %v589_v35 }
  0xa1   : > { %v897_v15 = vpop.permute.xlu1 %896 }
  0xa2   : > { %v598_v37 = vadd.f32 1e-06, %v597_v36 }
  0xa4   : > { %2546 = vrsqrt.f32 %v598_v37  ;;  %vm605_vm4 = vweird.f32 %v598_v37 }
  0xa9   : > { %v883_v16 = vpop.permute.xlu1 %882 }
  0xaa   : > { %v2547_v38 = vpop.eup %2546 }
  0xab   : > { %v600_v39 = vmul.f32 %v2547_v38, %v598_v37  ;;  %vm606_vm3 = vweird.f32 %v2547_v38 }
  0xac   : > { %vm607_vm5 = vmor %vm605_vm4, %vm606_vm3 }
  0xad   : > { %v601_v40 = vmul.f32 %v2547_v38, %v600_v39 }
  0xaf   : > { %v602_v43 = vmul.f32 0.5, %v601_v40 }
  0xb1   : > { %v603_v44 = vsub.f32 1.5, %v602_v43  ;;  %v881_v17 = vpop.permute.xlu1 %880 }
  0xb3   : > { %v604_v45 = vmul.f32 %v2547_v38, %v603_v44 }
  0xb5   : > { %v608_v49 = vsel %vm607_vm5, %v2547_v38, %v604_v45 }
  0xb6   : > { %v609_v50 = vmul.f32 %v608_v49, %v2778_v1 }
  0xb8   : > { %v613_v51 = vmul.f32 %v2541_v48, %v609_v50 }
  0xba   : > { %v623_v52 = vsel %vm586_vm1, %v613_v51, 0 }
  0xbb   : > { %v645_v53 = vand.u32 4294901760, %v623_v52 }
  0xbd   : > { %691 = vmatmul.f32.vlgmr.msra.gmra.mxu1 %v645_v53  ;;  %v646_v54 = vsub.f32 %v623_v52, %v645_v53 }
  0xbf   : > { %721 = vmatmul.f32.vlgmr.msra.gmra.mxu2 %v646_v54  ;;  %v647_v55 = vand.u32 4294901760, %v646_v54 }
  0xc1   : > { %748 = vmatmul.f32.vlgmr.msra.gmra.mxu3 %v647_v55  ;;  %v648_v56 = vsub.f32 %v646_v54, %v647_v55 }
  0xc3   : > { %v649_v57 = vand.u32 4294901760, %v648_v56 }
  0xc5   : > { %650 = vmatmul.f32.vlgmr.msra.gmra.mxu0 %v649_v57  ;;  %806 = vmatmul.f32.vlgmr.msrb.gmra.mxu1 %v645_v53 }
  0xcd   : > { %781 = vmatmul.f32.vlgmr.msrb.gmra.mxu0 %v645_v53 }
 0x13a   : > { %v692_v61 = vpop.f32.mrf.mxu1 }
 0x142   : > { %v651_v62 = vpop.f32.mrf.mxu0  ;;  %v722_v1 = vpop.f32.mrf.mxu2 }
 0x143   : > { %v652_v63 = vadd.f32 %v2542_v60, %v651_v62  ;;  %v807_v8 = vpop.f32.mrf.mxu1 }
 0x144   : > { %v749_v3 = vpop.f32.mrf.mxu3 }
 0x145   : > { %v693_v0 = vadd.f32 %v692_v61, %v652_v63 }
 0x147   : > { %v723_v2 = vadd.f32 %v722_v1, %v693_v0 }
 0x149   : > { %v750_v4 = vadd.f32 %v749_v3, %v723_v2 }
 0x14a   : > { %v782_v6 = vpop.f32.mrf.mxu0 }
 0x14b   : > { %v783_v7 = vadd.f32 %v782_v6, %v750_v4 }
 0x14d   : > { %v2819_v9 = vadd.f32 %v807_v8, %v783_v7 }
 0x14f   : > { %811 = vrot.lane.b32.xlu0 %v2819_v9, %s2614_s14  ;;  %v905_v10 = vmul.f32 %v895_v5, %v2819_v9  ;;  %v904_v13 = vmul.f32 %v893_v11, %v2819_v9  ;;  %v828_v2 = vmul.f32 %v820_v25, %v2819_v9 }
 0x151   : > { %914 = vrot.lane.b32.xlu1 %v905_v10, %s2615_s15 }
 0x157   : > { %878 = vrot.lane.b32.xlu0 %v2824_v12, %s2613_s16 }
 0x159   : > { %912 = vrot.lane.b32.xlu1 %v904_v13, %s2615_s15 }
 0x15f   : > { %836 = vrot.lane.b32.xlu0 %v824_v46, %s2616_s23 }
 0x161   : > { %840 = vrot.lane.b32.xlu1 %v826_v47, %s2616_s23 }
 0x167   : > { %814 = vrot.lane.b32.xlu0 %v2819_v9, %s2615_s15 }
 0x16f   : > { %842 = vrot.lane.b32.xlu0 %v827_v42, %s2616_s23 }
 0x1c1   : > { %v2833_v18 = vpop.permute.xlu0 %811 }
 0x1c2   : > { %v907_v19 = vmul.f32 %v899_v14, %v2833_v18  ;;  %v906_v22 = vmul.f32 %v897_v15, %v2833_v18  ;;  %v891_v26 = vmul.f32 %v883_v16, %v2833_v18  ;;  %v890_v31 = vmul.f32 %v881_v17, %v2833_v18 }
 0x1c3   : > { %v915_v23 = vpop.permute.xlu1 %914 }
 0x1c4   : > { %918 = vrot.lane.b32.xlu2 %v907_v19, %s2615_s15 }
 0x1c9   : > { %v879_v20 = vpop.permute.xlu0 %878 }
 0x1ca   : > { %v889_v21 = vmul.f32 %v879_v20, %v2819_v9 }
 0x1cb   : > { %v913_v30 = vpop.permute.xlu1 %912 }
 0x1cc   : > { %v925_v24 = vadd.f32 %v915_v23, %v889_v21  ;;  %916 = vrot.lane.b32.xlu2 %v906_v22, %s2615_s15 }
 0x1ce   : > { %938 = vrot.lane.b32.xlu0 %v925_v24, %s2613_s16 }
 0x1d1   : > { %v837_v29 = vpop.permute.xlu0 %836 }
 0x1d2   : > { %v848_v33 = vmul.f32 %v837_v29, %v2819_v9 }
 0x1d3   : > { %v841_v37 = vpop.permute.xlu1 %840 }
 0x1d4   : > { %876 = vrot.lane.b32.xlu2 %v820_v25, %s2613_s16 }
 0x1d9   : > { %v2849_v36 = vpop.permute.xlu0 %814 }
 0x1da   : > { %v850_v39 = vmul.f32 %v841_v37, %v2849_v36  ;;  %v830_v24 = vmul.f32 %v2810_v59, %v2849_v36 }
 0x1dc   : > { %838 = vrot.lane.b32.xlu2 %v2791_v41, %s2616_s23 }
 0x1e1   : > { %v843_v44 = vpop.permute.xlu0 %842 }
 0x1e4   : > { %817 = vrot.lane.b32.xlu2 %v2819_v9, %s2617_s26 }
 0x21e   : > { %v919_v27 = vpop.permute.xlu2 %918 }
 0x21f   : > { %v927_v28 = vadd.f32 %v919_v27, %v891_v26 }
 0x221   : > { %942 = vrot.lane.b32.xlu1 %v927_v28, %s2613_s16  ;;  %v829_v28 = vmul.f32 %v2824_v12, %v2833_v18 }
 0x226   : > { %v917_v32 = vpop.permute.xlu2 %916 }
 0x227   : > { %v926_v35 = vadd.f32 %v917_v32, %v890_v31 }
 0x229   : > { %940 = vrot.lane.b32.xlu2 %v926_v35, %s2613_s16  ;;  %856 = vrot.lane.b32.xlu1 %v848_v33, %s2618_s13 }
 0x22e   : > { %v877_v38 = vpop.permute.xlu2 %876 }
 0x22f   : > { %v888_v40 = vmul.f32 %v877_v38, %v2819_v9 }
 0x231   : > { %v924_v41 = vadd.f32 %v913_v30, %v888_v40  ;;  %860 = vrot.lane.b32.xlu1 %v850_v39, %s2618_s13 }
 0x233   : > { %936 = vrot.lane.b32.xlu2 %v924_v41, %s2613_s16 }
 0x236   : > { %v839_v42 = vpop.permute.xlu2 %838 }
 0x237   : > { %v849_v43 = vmul.f32 %v839_v42, %v2833_v18 }
 0x239   : > { %858 = vrot.lane.b32.xlu0 %v849_v43, %s2618_s13 }
 0x23e   : > { %v2855_v45 = vpop.permute.xlu2 %817 }
 0x23f   : > { %v851_v46 = vmul.f32 %v843_v44, %v2855_v45  ;;  %v831_v59 = vmul.f32 %v2805_v58, %v2855_v45 }
 0x240   : > { %v939_v49 = vpop.permute.xlu0 %938 }
 0x241   : > { %862 = vrot.lane.b32.xlu2 %v851_v46, %s2618_s13  ;;  %v959_v51 = vsel %vm944_vm6, %v939_v49, 0 }
 0x242   : > { %v2863_v55 = vand.u32 4294901760, %v959_v51 }
 0x244   : > { %v1043_v62 = vsub.f32 %v959_v51, %v2863_v55 }
 0x246   : > { %v1044_v10 = vand.u32 4294901760, %v1043_v62 }
 0x248   : > { %v1045_v16 = vsub.f32 %v1043_v62, %v1044_v10 }
 0x24a   : > { %v1046_v21 = vand.u32 4294901760, %v1045_v16 }
 0x283   : > { %v941_v47 = vpop.permute.xlu2 %940 }
 0x284   : > { %v961_v48 = vsel %vm944_vm6, %v941_v47, 0 }
 0x285   : > { %v2859_v50 = vand.u32 4294901760, %v961_v48 }
 0x287   : > { %v1037_v56 = vsub.f32 %v961_v48, %v2859_v50 }
 0x289   : > { %v1038_v1 = vand.u32 4294901760, %v1037_v56 }
 0x28b   : > { %v1039_v8 = vsub.f32 %v1037_v56, %v1038_v1 }
 0x28d   : > { %v937_v52 = vpop.permute.xlu2 %936  ;;  %v1040_v15 = vand.u32 4294901760, %v1039_v8  ;;  %v930_v8 = vld [vmem:[%s2734_s20 + $0x10] sm:$0xff] }
 0x28e   : > { %v957_v60 = vsel %vm944_vm6, %v937_v52, 0 }
 0x28f   : > { %v2868_v63 = vand.u32 4294901760, %v957_v60 }
 0x291   : > { %v1049_v6 = vsub.f32 %v957_v60, %v2868_v63 }
 0x293   : > { %v943_v53 = vpop.permute.xlu1 %942  ;;  %v1050_v17 = vand.u32 4294901760, %v1049_v6 }
 0x294   : > { %v963_v54 = vsel %vm944_vm6, %v943_v53, 0 }
 0x295   : > { %v977_v57 = vand.u32 4294901760, %v963_v54  ;;  %v1051_v23 = vsub.f32 %v1049_v6, %v1050_v17 }
 0x297   : > { %v1031_v61 = vsub.f32 %v963_v54, %v977_v57  ;;  %978 = vmatpush.xpose.msrb.mxu2 %v977_v57  ;;  %1129 = vmatpush.xpose.msra.mxu1 %v977_v57  ;;  %v1052_v27 = vand.u32 4294901760, %v1051_v23  ;;  %v931_v23 = vld [vmem:[%s2734_s20 + $0x18] sm:$0xff] }
 0x299   : > { %1085 = vmatpush.xpose.msra.mxu0 %v1031_v61  ;;  %v1032_v0 = vand.u32 4294901760, %v1031_v61 }
 0x29b   : > { %980 = vmatpush.xpose.msrb.mxu2 %v2859_v50  ;;  %1131 = vmatpush.xpose.msra.mxu1 %v2859_v50  ;;  %v857_v3 = vpop.permute.xlu1 %856  ;;  %v1033_v4 = vsub.f32 %v1031_v61, %v1032_v0  ;;  %v863_v32 = vpop.permute.xlu2 %862 }
 0x29c   : > { %v868_v5 = vadd.f32 %v857_v3, %v828_v2  ;;  %v871_v37 = vadd.f32 %v863_v32, %v831_v59 }
 0x29d   : > { %1088 = vmatpush.xpose.msra.mxu0 %v1037_v56  ;;  %v1034_v7 = vand.u32 4294901760, %v1033_v4  ;;  %v928_v56 = vld [vmem:[%s2734_s20] sm:$0xff] }
 0x29e   : > { %v946_v11 = vsel %vm944_vm6, %v868_v5, 0  ;;  %v955_v40 = vsel %vm944_vm6, %v871_v37, 0 }
 0x29f   : > { %v2875_v13 = vand.u32 4294901760, %v946_v11  ;;  %982 = vmatpush.xpose.msrb.mxu2 %v2863_v55  ;;  %1035 = vmatpush.xpose.msrb.mxu3 %v1034_v7  ;;  %v1009_v41 = vand.u32 4294901760, %v955_v40 }
 0x2a0   : > { %1133 = vmatpush.xpose.msra.mxu1 %v2863_v55 }
 0x2a1   : > { %v986_v14 = vsub.f32 %v946_v11, %v2875_v13  ;;  %1091 = vmatpush.xpose.msra.mxu0 %v1043_v62  ;;  %v1010_v44 = vsub.f32 %v955_v40, %v1009_v41 }
 0x2a3   : > { %984 = vmatpush.xpose.msrb.mxu2 %v2868_v63  ;;  %1041 = vmatpush.xpose.msrb.mxu3 %v1040_v15  ;;  %v987_v19 = vand.u32 4294901760, %v986_v14  ;;  %v861_v20 = vpop.permute.xlu1 %860  ;;  %v1011_v47 = vand.u32 4294901760, %v1010_v44 }
 0x2a4   : > { %1135 = vmatpush.xpose.msra.mxu1 %v2868_v63  ;;  %v870_v26 = vadd.f32 %v861_v20, %v830_v24 }
 0x2a5   : > { %1094 = vmatpush.xpose.msra.mxu0 %v1049_v6  ;;  %v988_v22 = vsub.f32 %v986_v14, %v987_v19  ;;  %v1012_v48 = vsub.f32 %v1010_v44, %v1011_v47 }
 0x2a6   : > { %v952_v30 = vsel %vm944_vm6, %v870_v26, 0 }
 0x2a7   : > { %1176 = vmatpush.xpose.msra.mxu2 %v1032_v0  ;;  %1139 = vmatmul.f32.vlgmr.msra.gmra.mxu1 %v987_v19  ;;  %v989_v25 = vand.u32 4294901760, %v988_v22  ;;  %v1001_v35 = vand.u32 4294901760, %v952_v30  ;;  %v1013_v49 = vand.u32 4294901760, %v1012_v48 }
 0x2a8   : > { %1047 = vmatpush.xpose.msrb.mxu3 %v1046_v21  ;;  %1097 = vmatmul.f32.vlgmr.msra.gmra.mxu0 %v986_v14 }
 0x2a9   : > { %990 = vmatmul.f32.vlgmr.msrb.gmra.mxu2 %v989_v25  ;;  %v1002_v38 = vsub.f32 %v952_v30, %v1001_v35 }
 0x2ab   : > { %1180 = vmatpush.xpose.msra.mxu2 %v1038_v1  ;;  %v859_v29 = vpop.permute.xlu0 %858  ;;  %v1003_v43 = vand.u32 4294901760, %v1002_v38 }
 0x2ac   : > { %1053 = vmatpush.xpose.msrb.mxu3 %v1052_v27  ;;  %v869_v31 = vadd.f32 %v859_v29, %v829_v28 }
 0x2ad   : > { %v1004_v45 = vsub.f32 %v1002_v38, %v1003_v43 }
 0x2ae   : > { %v949_v33 = vsel %vm944_vm6, %v869_v31, 0 }
 0x2af   : > { %1184 = vmatpush.xpose.msra.mxu2 %v1044_v10  ;;  %1055 = vmatmul.f32.vlgmr.msrb.gmra.mxu3 %v2875_v13  ;;  %v993_v36 = vand.u32 4294901760, %v949_v33  ;;  %v1005_v46 = vand.u32 4294901760, %v1004_v45 }
 0x2b0   : > { %1219 = vmatpush.xpose.msra.mxu3 %v977_v57 }
 0x2b1   : > { %v994_v12 = vsub.f32 %v949_v33, %v993_v36 }
 0x2b3   : > { %1188 = vmatpush.xpose.msra.mxu2 %v1050_v17  ;;  %1102 = vmatmul.f32.gmra.mxu0 %v994_v12  ;;  %v995_v39 = vand.u32 4294901760, %v994_v12 }
 0x2b4   : > { %1221 = vmatpush.xpose.msra.mxu3 %v2859_v50 }
 0x2b5   : > { %1145 = vmatmul.f32.gmra.mxu1 %v995_v39  ;;  %v996_v58 = vsub.f32 %v994_v12, %v995_v39 }
 0x2b7   : > { %1059 = vmatmul.f32.gmra.mxu3 %v993_v36  ;;  %v997_v42 = vand.u32 4294901760, %v996_v58 }
 0x2b8   : > { %1223 = vmatpush.xpose.msra.mxu3 %v2863_v55 }
 0x2b9   : > { %998 = vmatmul.f32.gmra.mxu2 %v997_v42 }
 0x2bb   : > { %1107 = vmatmul.f32.gmra.mxu0 %v1002_v38 }
 0x2bc   : > { %1225 = vmatpush.xpose.msra.mxu3 %v2868_v63  ;;  %v929_v63 = vld [vmem:[%s2734_s20 + $0x8] sm:$0xff]  ;;  %s2619_s20 = smov 8  }
 0x2bd   : > { %1151 = vmatmul.f32.gmra.mxu1 %v1003_v43 }
 0x2bf   : > { %1063 = vmatmul.f32.gmra.mxu3 %v1001_v35 }
 0x2c1   : > { %1006 = vmatmul.f32.gmra.mxu2 %v1005_v46 }
 0x2c3   : > { %1112 = vmatmul.f32.gmra.mxu0 %v1010_v44 }
 0x2c5   : > { %1157 = vmatmul.f32.gmra.mxu1 %v1011_v47 }
 0x2c7   : > { %1067 = vmatmul.f32.gmra.mxu3 %v1009_v41 }
 0x2c9   : > { %1014 = vmatmul.f32.gmra.mxu2 %v1013_v49 }
 0x2cf   : > { %1227 = vmatmul.f32.vlgmr.msra.gmra.mxu3 %v2875_v13 }
 0x2d1   : > { %1190 = vmatmul.f32.vlgmr.msra.gmra.mxu2 %v2875_v13 }
 0x2d7   : > { %1231 = vmatmul.f32.gmra.mxu3 %v993_v36 }
 0x2d9   : > { %1194 = vmatmul.f32.gmra.mxu2 %v993_v36 }
 0x2df   : > { %1235 = vmatmul.f32.gmra.mxu3 %v1001_v35 }
 0x2e1   : > { %1198 = vmatmul.f32.gmra.mxu2 %v1001_v35 }
 0x2e7   : > { %1239 = vmatmul.f32.gmra.mxu3 %v1009_v41 }
 0x2e9   : > { %1202 = vmatmul.f32.gmra.mxu2 %v1009_v41 }
 0x324   : > { %v1140_v1 = vpop.f32.mrf.mxu1 }
 0x325   : > { %v1098_v61 = vpop.f32.mrf.mxu0 }
 0x32c   : > { %v991_v51 = vpop.f32.mrf.mxu2 }
 0x32d   : > { %v992_v57 = vadd.f32 %v991_v51, %v928_v56 }
 0x330   : > { %v1103_v5 = vpop.f32.mrf.mxu0 }
 0x332   : > { %v1056_v50 = vpop.f32.mrf.mxu3  ;;  %v1146_v13 = vpop.f32.mrf.mxu1 }
 0x333   : > { %v1057_v62 = vadd.f32 %v1056_v50, %v992_v57 }
 0x335   : > { %v1099_v2 = vadd.f32 %v1098_v61, %v1057_v62 }
 0x337   : > { %v1141_v7 = vadd.f32 %v1140_v1, %v1099_v2 }
 0x338   : > { %v1108_v22 = vpop.f32.mrf.mxu0 }
 0x33a   : > { %v1060_v52 = vpop.f32.mrf.mxu3  ;;  %v1152_v29 = vpop.f32.mrf.mxu1 }
 0x33c   : > { %v999_v53 = vpop.f32.mrf.mxu2 }
 0x33d   : > { %v1000_v3 = vadd.f32 %v999_v53, %v929_v63 }
 0x33f   : > { %v1061_v6 = vadd.f32 %v1060_v52, %v1000_v3 }
 0x340   : > { %v1113_v36 = vpop.f32.mrf.mxu0 }
 0x341   : > { %v1104_v16 = vadd.f32 %v1103_v5, %v1061_v6 }
 0x342   : > { %v1064_v54 = vpop.f32.mrf.mxu3  ;;  %v1158_v39 = vpop.f32.mrf.mxu1 }
 0x343   : > { %v1147_v21 = vadd.f32 %v1146_v13, %v1104_v16 }
 0x344   : > { %v1007_v55 = vpop.f32.mrf.mxu2 }
 0x345   : > { %v1008_v14 = vadd.f32 %v1007_v55, %v930_v8 }
 0x347   : > { %v1065_v20 = vadd.f32 %v1064_v54, %v1008_v14 }
 0x349   : > { %v1109_v28 = vadd.f32 %v1108_v22, %v1065_v20 }
 0x34a   : > { %v1068_v60 = vpop.f32.mrf.mxu3 }
 0x34b   : > { %v1153_v32 = vadd.f32 %v1152_v29, %v1109_v28 }
 0x34c   : > { %v1015_v0 = vpop.f32.mrf.mxu2 }
 0x34d   : > { %v1016_v26 = vadd.f32 %v1015_v0, %v931_v23 }
 0x34f   : > { %v1069_v31 = vadd.f32 %v1068_v60, %v1016_v26 }
 0x351   : > { %v1114_v12 = vadd.f32 %v1113_v36, %v1069_v31 }
 0x352   : > { %v1228_v4 = vpop.f32.mrf.mxu3 }
 0x353   : > { %v1159_v40 = vadd.f32 %v1158_v39, %v1114_v12 }
 0x354   : > { %v1191_v10 = vpop.f32.mrf.mxu2 }
 0x355   : > { %v1192_v11 = vadd.f32 %v1191_v10, %v1141_v7 }
 0x357   : > { %v1229_v15 = vadd.f32 %v1228_v4, %v1192_v11 }
 0x359   : > { %v1243_v17 = vsel %vm586_vm1, %v1229_v15, -inf }
 0x35a   : > { %v1232_v19 = vpop.f32.mrf.mxu3  ;;  %1244 = vmax.xlane.f32.xlu0 %v1243_v17 }
 0x35c   : > { %v1195_v24 = vpop.f32.mrf.mxu2 }
 0x35d   : > { %v1196_v25 = vadd.f32 %v1195_v24, %v1147_v21 }
 0x35f   : > { %v1233_v27 = vadd.f32 %v1232_v19, %v1196_v25 }
 0x361   : > { %v1246_v30 = vsel %vm586_vm1, %v1233_v27, -inf }
 0x362   : > { %1247 = vmax.xlane.f32.xlu1 %v1246_v30  ;;  %v1236_v59 = vpop.f32.mrf.mxu3 }
 0x364   : > { %v1199_v33 = vpop.f32.mrf.mxu2 }
 0x365   : > { %v1200_v35 = vadd.f32 %v1199_v33, %v1153_v32 }
 0x367   : > { %v1237_v37 = vadd.f32 %v1236_v59, %v1200_v35 }
 0x369   : > { %v1249_v38 = vsel %vm586_vm1, %v1237_v37, -inf }
 0x36a   : > { %1250 = vmax.xlane.f32.xlu2 %v1249_v38  ;;  %v1240_v42 = vpop.f32.mrf.mxu3 }
 0x36c   : > { %v1203_v58 = vpop.f32.mrf.mxu2 }
 0x36d   : > { %v1204_v41 = vadd.f32 %v1203_v58, %v1159_v40 }
 0x36f   : > { %v1241_v43 = vadd.f32 %v1240_v42, %v1204_v41 }
 0x371   : > { %v1252_v44 = vsel %vm586_vm1, %v1241_v43, -inf }
 0x372   : > { %1253 = vmax.xlane.f32.xlu0 %v1252_v44 }
 0x37b   : > { %1289 = vrot.lane.b32.xlu1 %v2833_v18, %s2616_s23 }
 0x3cd   : > { %v1245_v45 = vpop.xlane.xlu0 %1244 }
 0x3ce   : > { %v1255_v46 = vsub.f32 %v1229_v15, %v1245_v45 }
 0x3d0   : > { %v1259_v47 = vmul.f32 1.442695, %v1255_v46 }
 0x3d2   : > { %2548 = vpow2.f32 %v1259_v47 }
 0x3d5   : > { %v1248_v48 = vpop.xlane.xlu1 %1247 }
 0x3d6   : > { %v1256_v49 = vsub.f32 %v1233_v27, %v1248_v48 }
 0x3d8   : > { %v2549_v50 = vpop.eup %2548  ;;  %v1261_v51 = vmul.f32 1.442695, %v1256_v49 }
 0x3d9   : > { %v1267_v52 = vsel %vm586_vm1, %v2549_v50, 0.0 }
 0x3da   : > { %2550 = vpow2.f32 %v1261_v51  ;;  %1268 = vadd.xlane.f32.xlu2 %v1267_v52 }
 0x3dd   : > { %v1251_v53 = vpop.xlane.xlu2 %1250 }
 0x3de   : > { %v1257_v54 = vsub.f32 %v1237_v37, %v1251_v53 }
 0x3e0   : > { %v2551_v55 = vpop.eup %2550  ;;  %v1263_v56 = vmul.f32 1.442695, %v1257_v54 }
 0x3e1   : > { %v1270_v57 = vsel %vm586_vm1, %v2551_v55, 0.0 }
 0x3e2   : > { %2552 = vpow2.f32 %v1263_v56  ;;  %1271 = vadd.xlane.f32.xlu0 %v1270_v57 }
 0x3e5   : > { %v1254_v18 = vpop.xlane.xlu0 %1253 }
 0x3e6   : > { %v1258_v60 = vsub.f32 %v1241_v43, %v1254_v18 }
 0x3e8   : > { %v2909_v61 = vpop.eup %2552  ;;  %v1265_v62 = vmul.f32 1.442695, %v1258_v60 }
 0x3e9   : > { %v1273_v63 = vsel %vm586_vm1, %v2909_v61, 0.0 }
 0x3ea   : > { %2554 = vpow2.f32 %v1265_v62  ;;  %1274 = vadd.xlane.f32.xlu0 %v1273_v63 }
 0x3ed   : > { %v1290_v0 = vpop.permute.xlu1 %1289 }
 0x3ee   : > { %v2913_v1 = vand.u32 4294901760, %v1290_v0 }
 0x3f0   : > { %v2915_v2 = vpop.eup %2554  ;;  %v1371_v3 = vsub.f32 %v1290_v0, %v2913_v1  ;;  %1318 = vmatpush.msrb.mxu0 %v2913_v1  ;;  %1469 = vmatpush.msrb.mxu3 %v2913_v1 }
 0x3f1   : > { %v1276_v4 = vsel %vm586_vm1, %v2915_v2, 0.0 }
 0x3f2   : > { %v1372_v5 = vand.u32 4294901760, %v1371_v3  ;;  %1320 = vmatpush.msrb.mxu0 %v2913_v1  ;;  %1425 = vmatpush.msrb.mxu2 %v1371_v3 }
 0x3f3   : > { %1471 = vmatpush.msrb.mxu3 %v2913_v1  ;;  %1287 = vrot.lane.b32.xlu2 %v2819_v9, %s2616_s23 }
 0x3f4   : > { %1277 = vadd.xlane.f32.xlu0 %v1276_v4  ;;  %1428 = vmatpush.msrb.mxu2 %v1371_v3  ;;  %v1373_v6 = vsub.f32 %v1371_v3, %v1372_v5 }
 0x3f6   : > { %v1374_v7 = vand.u32 4294901760, %v1373_v6 }
 0x3f8   : > { %1375 = vmatpush.msrb.mxu1 %v1374_v7 }
 0x3fa   : > { %1381 = vmatpush.msrb.mxu1 %v1374_v7 }
 0x44d   : > { %v1269_v8 = vpop.xlane.xlu2 %1268 }
 0x44e   : > { %2556 = vrcp.f32 %v1269_v8 }
 0x454   : > { %v2557_v10 = vpop.eup %2556 }
 0x455   : > { %v1283_v11 = vmul.f32 %v2557_v10, %v2549_v50  ;;  %v1288_v13 = vpop.permute.xlu2 %1287  ;;  %v1272_v14 = vpop.xlane.xlu0 %1271 }
 0x456   : > { %v1321_v15 = vand.u32 4294901760, %v1288_v13  ;;  %2558 = vrcp.f32 %v1272_v14 }
 0x457   : > { %v1294_v16 = vsel %vm586_vm1, %v1283_v11, 0 }
 0x458   : > { %v1383_v17 = vsub.f32 %v1288_v13, %v1321_v15  ;;  %1322 = vmatpush.msrb.mxu0 %v1321_v15  ;;  %1473 = vmatpush.msrb.mxu3 %v1321_v15  ;;  %v2927_v9 = vand.u32 4294901760, %v1294_v16 }
 0x45a   : > { %1324 = vmatpush.msrb.mxu0 %v1321_v15  ;;  %1431 = vmatpush.msrb.mxu2 %v1383_v17  ;;  %v1326_v19 = vsub.f32 %v1294_v16, %v2927_v9  ;;  %v1384_v20 = vand.u32 4294901760, %v1383_v17 }
 0x45b   : > { %1475 = vmatpush.msrb.mxu3 %v1321_v15 }
 0x45c   : > { %1516 = vmatpush.msra.mxu0 %v1372_v5  ;;  %v2559_v21 = vpop.eup %2558  ;;  %1434 = vmatpush.msrb.mxu2 %v1383_v17  ;;  %v1327_v22 = vand.u32 4294901760, %v1326_v19  ;;  %v1385_v23 = vsub.f32 %v1383_v17, %v1384_v20 }
 0x45d   : > { %1437 = vmatmul.f32.vlgmr.msrb.gmra.mxu2 %v1326_v19  ;;  %v1275_v24 = vpop.xlane.xlu0 %1274  ;;  %v1284_v25 = vmul.f32 %v2559_v21, %v2551_v55 }
 0x45e   : > { %1520 = vmatpush.msra.mxu0 %v1372_v5  ;;  %2560 = vrcp.f32 %v1275_v24  ;;  %1479 = vmatmul.f32.vlgmr.msrb.gmra.mxu3 %v1327_v22  ;;  %v1386_v26 = vand.u32 4294901760, %v1385_v23  ;;  %v1328_v27 = vsub.f32 %v1326_v19, %v1327_v22 }
 0x45f   : > { %v1297_v28 = vsel %vm586_vm1, %v1284_v25, 0 }
 0x460   : > { %1524 = vmatpush.msra.mxu0 %v1384_v20  ;;  %1387 = vmatpush.msrb.mxu1 %v1386_v26  ;;  %v1329_v29 = vand.u32 4294901760, %v1328_v27  ;;  %v1333_v30 = vand.u32 4294901760, %v1297_v28 }
 0x462   : > { %1528 = vmatpush.msra.mxu0 %v1384_v20  ;;  %1393 = vmatpush.msrb.mxu1 %v1386_v26  ;;  %v1334_v31 = vsub.f32 %v1297_v28, %v1333_v30 }
 0x463   : > { %1330 = vmatmul.f32.vlgmr.msrb.gmra.mxu0 %v1329_v29  ;;  %1395 = vmatmul.f32.vlgmr.msrb.gmra.mxu1 %v2927_v9 }
 0x464   : > { %v2561_v32 = vpop.eup %2560  ;;  %1559 = vmatpush.msra.mxu1 %v2913_v1  ;;  %v1335_v59 = vand.u32 4294901760, %v1334_v31 }
 0x465   : > { %1442 = vmatmul.f32.gmra.mxu2 %v1334_v31  ;;  %v1285_v33 = vmul.f32 %v2561_v32, %v2909_v61 }
 0x466   : > { %1561 = vmatpush.msra.mxu1 %v2913_v1  ;;  %1485 = vmatmul.f32.gmra.mxu3 %v1335_v59  ;;  %v1336_v35 = vsub.f32 %v1334_v31, %v1335_v59  ;;  %v1603_v59 = vld [vmem:[%s2753_s22 + $0x18] sm:$0xff] }
 0x467   : > { %v1278_v36 = vpop.xlane.xlu0 %1277  ;;  %v1300_v37 = vsel %vm586_vm1, %v1285_v33, 0  ;;  %v1619_v33 = vand.u32 4294901760, %v1603_v59 }
 0x468   : > { %2562 = vrcp.f32 %v1278_v36  ;;  %1563 = vmatpush.msra.mxu1 %v1321_v15  ;;  %v1337_v12 = vand.u32 4294901760, %v1336_v35  ;;  %v1341_v38 = vand.u32 4294901760, %v1300_v37  ;;  %v1602_v35 = vld [vmem:[%s2753_s22 + $0x10] sm:$0xff] }
 0x469   : > { %1620 = vmatpush.msra.mxu2 %v1619_v33  ;;  %v1649_v36 = vsub.f32 %v1603_v59, %v1619_v33 }
 0x46a   : > { %1565 = vmatpush.msra.mxu1 %v1321_v15  ;;  %v1342_v39 = vsub.f32 %v1300_v37, %v1341_v38  ;;  %v1621_v37 = vand.u32 4294901760, %v1602_v35 }
 0x46b   : > { %1338 = vmatmul.f32.gmra.mxu0 %v1337_v12  ;;  %1399 = vmatmul.f32.gmra.mxu1 %v1333_v30  ;;  %v1601_v12 = vld [vmem:[%s2753_s22 + $0x8] sm:$0xff] }
 0x46c   : > { %v1343_v40 = vand.u32 4294901760, %v1342_v39  ;;  %1720 = vmatpush.msrb.mxu1 %v1619_v33  ;;  %1691 = vmatpush.msrb.mxu0 %v1649_v36 }
 0x46d   : > { %1447 = vmatmul.f32.gmra.mxu2 %v1342_v39 }
 0x46e   : > { %v2563_v58 = vpop.eup %2562  ;;  %1491 = vmatmul.f32.gmra.mxu3 %v1343_v40  ;;  %v1344_v41 = vsub.f32 %v1342_v39, %v1343_v40  ;;  %v1655_v39 = vsub.f32 %v1602_v35, %v1621_v37  ;;  %1622 = vmatpush.msra.mxu2 %v1621_v37  ;;  %v1623_v40 = vand.u32 4294901760, %v1601_v12 }
 0x46f   : > { %v1286_v42 = vmul.f32 %v2563_v58, %v2915_v2  ;;  %v1600_v58 = vld [vmem:[%s2753_s22] sm:$0xff]  ;;  %1722 = vmatpush.msrb.mxu1 %v1621_v37 }
 0x470   : > { %v1345_v43 = vand.u32 4294901760, %v1344_v41  ;;  %1694 = vmatpush.msrb.mxu0 %v1655_v39  ;;  %1624 = vmatpush.msra.mxu2 %v1623_v40 }
 0x471   : > { %v1303_v44 = vsel %vm586_vm1, %v1286_v42, 0  ;;  %v1656_v42 = vand.u32 4294901760, %v1655_v39  ;;  %1724 = vmatpush.msrb.mxu1 %v1623_v40 }
 0x472   : > { %v1349_v45 = vand.u32 4294901760, %v1303_v44 }
 0x473   : > { %1346 = vmatmul.f32.gmra.mxu0 %v1345_v43  ;;  %1403 = vmatmul.f32.gmra.mxu1 %v1341_v38  ;;  %v1625_v43 = vand.u32 4294901760, %v1600_v58 }
 0x474   : > { %v1350_v46 = vsub.f32 %v1303_v44, %v1349_v45  ;;  %v1661_v44 = vsub.f32 %v1601_v12, %v1623_v40 }
 0x475   : > { %1726 = vmatpush.msrb.mxu1 %v1625_v43  ;;  %1626 = vmatpush.msra.mxu2 %v1625_v43 }
 0x476   : > { %1452 = vmatmul.f32.gmra.mxu2 %v1350_v46  ;;  %v1351_v47 = vand.u32 4294901760, %v1350_v46  ;;  %1697 = vmatpush.msrb.mxu0 %v1661_v44 }
 0x478   : > { %1497 = vmatmul.f32.gmra.mxu3 %v1351_v47  ;;  %v1352_v48 = vsub.f32 %v1350_v46, %v1351_v47  ;;  %v1657_v46 = vsub.f32 %v1655_v39, %v1656_v42  ;;  %v1667_v47 = vsub.f32 %v1600_v58, %v1625_v43 }
 0x47a   : > { %v1353_v49 = vand.u32 4294901760, %v1352_v48  ;;  %v1662_v48 = vand.u32 4294901760, %v1661_v44  ;;  %1700 = vmatpush.msrb.mxu0 %v1667_v47 }
 0x47b   : > { %1407 = vmatmul.f32.gmra.mxu1 %v1349_v45 }
 0x47c   : > { %1354 = vmatmul.f32.gmra.mxu0 %v1353_v49  ;;  %v1658_v49 = vand.u32 4294901760, %v1657_v46 }
 0x483   : > { %1567 = vmatmul.f32.vlgmr.msra.gmra.mxu1 %v2927_v9 }
 0x484   : > { %1530 = vmatmul.f32.vlgmr.msra.gmra.mxu0 %v2927_v9 }
 0x48b   : > { %1571 = vmatmul.f32.gmra.mxu1 %v1333_v30 }
 0x48c   : > { %1534 = vmatmul.f32.gmra.mxu0 %v1333_v30 }
 0x493   : > { %1575 = vmatmul.f32.gmra.mxu1 %v1341_v38 }
 0x494   : > { %1538 = vmatmul.f32.gmra.mxu0 %v1341_v38  ;;  %v1650_v38 = vand.u32 4294901760, %v1649_v36 }
 0x496   : > { %v1651_v41 = vsub.f32 %v1649_v36, %v1650_v38  ;;  %1749 = vmatpush.msrb.mxu2 %v1650_v38 }
 0x498   : > { %1753 = vmatpush.msrb.mxu2 %v1656_v42 }
 0x49a   : > { %1757 = vmatpush.msrb.mxu2 %v1662_v48 }
 0x49b   : > { %1579 = vmatmul.f32.gmra.mxu1 %v1349_v45 }
 0x49c   : > { %1542 = vmatmul.f32.gmra.mxu0 %v1349_v45  ;;  %v1652_v45 = vand.u32 4294901760, %v1651_v41 }
 0x49e   : > { %1653 = vmatpush.msra.mxu3 %v1652_v45 }
 0x4a0   : > { %1659 = vmatpush.msra.mxu3 %v1658_v49 }
 0x4e0   : > { %v1331_v50 = vpop.f32.mrf.mxu0  ;;  %v1396_v51 = vpop.f32.mrf.mxu1 }
 0x4e1   : > { %v1397_v52 = vadd.f32 %v1396_v51, %v1331_v50  ;;  %v1438_v53 = vpop.f32.mrf.mxu2  ;;  %v1480_v55 = vpop.f32.mrf.mxu3  ;;  %v1668_v50 = vand.u32 4294901760, %v1667_v47  ;;  %v1663_v51 = vsub.f32 %v1661_v44, %v1662_v48 }
 0x4e3   : > { %v1439_v54 = vadd.f32 %v1438_v53, %v1397_v52  ;;  %v1669_v52 = vsub.f32 %v1667_v47, %v1668_v50  ;;  %v1664_v53 = vand.u32 4294901760, %v1663_v51  ;;  %1761 = vmatpush.msrb.mxu2 %v1668_v50 }
 0x4e5   : > { %v1481_v56 = vadd.f32 %v1480_v55, %v1439_v54  ;;  %v1670_v54 = vand.u32 4294901760, %v1669_v52  ;;  %1665 = vmatpush.msra.mxu3 %v1664_v53  ;;  %v2543_v52 = vld [vmem:[%s561_s19] ss:$0 sm:$0xff] }
 0x4e7   : > { %1671 = vmatpush.msra.mxu3 %v1670_v54 }
 0x4e8   : > { %v1339_v57 = vpop.f32.mrf.mxu0  ;;  %v1400_v18 = vpop.f32.mrf.mxu1 }
 0x4e9   : > { %v1443_v0 = vpop.f32.mrf.mxu2  ;;  %v1401_v1 = vadd.f32 %v1400_v18, %v1339_v57  ;;  %v1486_v5 = vpop.f32.mrf.mxu3  ;;  %1780 = vmatpush.msrb.mxu3 %v1619_v33 }
 0x4eb   : > { %v1444_v6 = vadd.f32 %v1443_v0, %v1401_v1  ;;  %1782 = vmatpush.msrb.mxu3 %v1621_v37 }
 0x4ed   : > { %v1487_v8 = vadd.f32 %v1486_v5, %v1444_v6  ;;  %1784 = vmatpush.msrb.mxu3 %v1623_v40 }
 0x4ef   : > { %1786 = vmatpush.msrb.mxu3 %v1625_v43 }
 0x4f0   : > { %v1347_v60 = vpop.f32.mrf.mxu0  ;;  %v1404_v61 = vpop.f32.mrf.mxu1 }
 0x4f1   : > { %v1405_v10 = vadd.f32 %v1404_v61, %v1347_v60  ;;  %v1448_v13 = vpop.f32.mrf.mxu2  ;;  %v1492_v9 = vpop.f32.mrf.mxu3 }
 0x4f3   : > { %v1449_v16 = vadd.f32 %v1448_v13, %v1405_v10 }
 0x4f5   : > { %v1493_v19 = vadd.f32 %v1492_v9, %v1449_v16 }
 0x4f8   : > { %v1408_v62 = vpop.f32.mrf.mxu1 }
 0x4f9   : > { %v1355_v63 = vpop.f32.mrf.mxu0  ;;  %v1453_v24 = vpop.f32.mrf.mxu2 }
 0x4fa   : > { %v1409_v20 = vadd.f32 %v1408_v62, %v1355_v63 }
 0x4fb   : > { %v1498_v27 = vpop.f32.mrf.mxu3 }
 0x4fc   : > { %v1454_v25 = vadd.f32 %v1453_v24, %v1409_v20 }
 0x4fe   : > { %v1499_v28 = vadd.f32 %v1498_v27, %v1454_v25 }
 0x500   : > { %v1568_v2 = vpop.f32.mrf.mxu1 }
 0x501   : > { %v1531_v3 = vpop.f32.mrf.mxu0 }
 0x502   : > { %v1532_v4 = vadd.f32 %v1531_v3, %v1481_v56 }
 0x504   : > { %v2940_v7 = vadd.f32 %v1568_v2, %v1532_v4 }
 0x508   : > { %v1572_v11 = vpop.f32.mrf.mxu1 }
 0x509   : > { %v1535_v14 = vpop.f32.mrf.mxu0 }
 0x50a   : > { %v1536_v15 = vadd.f32 %v1535_v14, %v1487_v8 }
 0x50c   : > { %v1573_v17 = vadd.f32 %v1572_v11, %v1536_v15 }
 0x50e   : > { %1584 = vrot.lane.b32.xlu1 %v1573_v17, %s2619_s20  ;;  %v2570_v17 = vld [vmem:[%s2773_s2] sm:$0xff] }
 0x510   : > { %v1576_v21 = vpop.f32.mrf.mxu1 }
 0x511   : > { %v1539_v22 = vpop.f32.mrf.mxu0 }
 0x512   : > { %v1540_v23 = vadd.f32 %v1539_v22, %v1493_v19 }
 0x514   : > { %v1577_v26 = vadd.f32 %v1576_v21, %v1540_v23  ;;  %v1818_v21 = vld [vmem:[%s2762_s3 + $0x18] sm:$0xff]  ;;  %v1817_v23 = vld [vmem:[%s2762_s3 + $0x10] sm:$0xff] }
 0x515   : > { %v1834_v22 = vand.u32 4294901760, %v1818_v21  ;;  %v1836_v25 = vand.u32 4294901760, %v1817_v23 }
 0x516   : > { %1588 = vrot.lane.b32.xlu0 %v1577_v26, %s2620_s18  ;;  %v1816_v26 = vld [vmem:[%s2762_s3 + $0x8] sm:$0xff] }
 0x517   : > { %v1864_v24 = vsub.f32 %v1818_v21, %v1834_v22  ;;  %1835 = vmatpush.msra.mxu0 %v1834_v22 }
 0x518   : > { %v1580_v30 = vpop.f32.mrf.mxu1 }
 0x519   : > { %v1543_v29 = vpop.f32.mrf.mxu0  ;;  %v1865_v27 = vand.u32 4294901760, %v1864_v24  ;;  %1837 = vmatpush.msra.mxu0 %v1836_v25 }
 0x51a   : > { %v1544_v31 = vadd.f32 %v1543_v29, %v1499_v28  ;;  %v1870_v28 = vsub.f32 %v1817_v23, %v1836_v25  ;;  %v1838_v29 = vand.u32 4294901760, %v1816_v26 }
 0x51c   : > { %v1581_v32 = vadd.f32 %v1580_v30, %v1544_v31  ;;  %v1815_v30 = vld [vmem:[%s2762_s3] sm:$0xff]  ;;  %v1866_v31 = vsub.f32 %v1864_v24, %v1865_v27  ;;  %v1876_v59 = vsub.f32 %v1816_v26, %v1838_v29  ;;  %1839 = vmatpush.msra.mxu0 %v1838_v29 }
 0x51d   : > { %v1840_v33 = vand.u32 4294901760, %v1815_v30 }
 0x51e   : > { %1592 = vrot.lane.b32.xlu2 %v1581_v32, %s2621_s0  ;;  %v1871_v32 = vand.u32 4294901760, %v1870_v28  ;;  %v1867_v35 = vand.u32 4294901760, %v1866_v31  ;;  %v1877_v37 = vand.u32 4294901760, %v1876_v59 }
 0x51f   : > { %v1882_v12 = vsub.f32 %v1815_v30, %v1840_v33  ;;  %1841 = vmatpush.msra.mxu0 %v1840_v33 }
 0x520   : > { %v1872_v36 = vsub.f32 %v1870_v28, %v1871_v32  ;;  %1868 = vmatpush.msra.mxu1 %v1867_v35  ;;  %v1878_v39 = vsub.f32 %v1876_v59, %v1877_v37 }
 0x521   : > { %v1883_v40 = vand.u32 4294901760, %v1882_v12 }
 0x522   : > { %v1873_v38 = vand.u32 4294901760, %v1872_v36  ;;  %v1879_v58 = vand.u32 4294901760, %v1878_v39 }
 0x523   : > { %v1884_v41 = vsub.f32 %v1882_v12, %v1883_v40 }
 0x524   : > { %1874 = vmatpush.msra.mxu1 %v1873_v38 }
 0x525   : > { %v1885_v42 = vand.u32 4294901760, %v1884_v41 }
 0x526   : > { %1880 = vmatpush.msra.mxu1 %v1879_v58 }
 0x528   : > { %1886 = vmatpush.msra.mxu1 %v1885_v42 }
 0x578   : > { %v1593_v18 = vpop.permute.xlu2 %1592 }
 0x580   : > { %v1585_v55 = vpop.permute.xlu1 %1584 }
 0x581   : > { %v1595_v56 = vsel %vm944_vm6, %v2940_v7, %v1585_v55 }
 0x588   : > { %v1589_v57 = vpop.permute.xlu0 %1588 }
 0x589   : > { %v1597_v60 = vsel %vm1596_vm7, %v1595_v56, %v1589_v57 }
 0x58a   : > { %v1599_v61 = vsel %vm1598_vm8, %v1597_v60, %v1593_v18 }
 0x58b   : > { %v1605_v62 = vsel %vm586_vm1, %v1599_v61, 0 }
 0x58c   : > { %v1627_v63 = vand.u32 4294901760, %v1605_v62 }
 0x58e   : > { %v1628_v0 = vsub.f32 %v1605_v62, %v1627_v63  ;;  %1673 = vmatmul.f32.vlgmr.msra.gmra.mxu3 %v1627_v63  ;;  %v2039_v62 = vld [vmem:[%s2768_s1 + $0x38] sm:$0xff] }
 0x58f   : > { %1935 = vmatpush.msra.mxu3 %v1834_v22 }
 0x590   : > { %1703 = vmatmul.f32.vlgmr.msrb.gmra.mxu0 %v1628_v0  ;;  %v1629_v1 = vand.u32 4294901760, %v1628_v0 }
 0x591   : > { %1937 = vmatpush.msra.mxu3 %v1836_v25  ;;  %1964 = vmatpush.msrb.mxu0 %v1865_v27 }
 0x592   : > { %1730 = vmatmul.f32.vlgmr.msrb.gmra.mxu1 %v1629_v1  ;;  %v1630_v2 = vsub.f32 %v1628_v0, %v1629_v1  ;;  %v2037_v0 = vld [vmem:[%s2768_s1 + $0x28] sm:$0xff]  ;;  %v2970_v1 = vand.u32 4294901760, %v2039_v62 }
 0x593   : > { %1939 = vmatpush.msra.mxu3 %v1838_v29  ;;  %1968 = vmatpush.msrb.mxu0 %v1871_v32 }
 0x594   : > { %v1631_v3 = vand.u32 4294901760, %v1630_v2  ;;  %1995 = vmatpush.msrb.mxu1 %v1834_v22 }
 0x595   : > { %1941 = vmatpush.msra.mxu3 %v1840_v33  ;;  %1972 = vmatpush.msrb.mxu0 %v1877_v37 }
 0x596   : > { %1632 = vmatmul.f32.vlgmr.msra.gmra.mxu2 %v1631_v3  ;;  %1788 = vmatmul.f32.vlgmr.msrb.gmra.mxu3 %v1627_v63  ;;  %v2974_v3 = vand.u32 4294901760, %v2037_v0 }
 0x597   : > { %1906 = vmatpush.msra.mxu2 %v1864_v24  ;;  %1976 = vmatpush.msrb.mxu0 %v1883_v40 }
 0x598   : > { %1997 = vmatpush.msrb.mxu1 %v1836_v25 }
 0x599   : > { %1909 = vmatpush.msra.mxu2 %v1870_v28 }
 0x59a   : > { %1999 = vmatpush.msrb.mxu1 %v1838_v29 }
 0x59b   : > { %1912 = vmatpush.msra.mxu2 %v1876_v59 }
 0x59c   : > { %2001 = vmatpush.msrb.mxu1 %v1840_v33 }
 0x59d   : > { %1915 = vmatpush.msra.mxu2 %v1882_v12 }
 0x59e   : > { %1763 = vmatmul.f32.vlgmr.msrb.gmra.mxu2 %v1627_v63  ;;  %v2038_v63 = vld [vmem:[%s2768_s1 + $0x30] sm:$0xff] }
 0x59f   : > { %v2972_v2 = vand.u32 4294901760, %v2038_v63  ;;  %2053 = vmatpush.msrb.mxu2 %v2970_v1 }
 0x5a1   : > { %2055 = vmatpush.msrb.mxu2 %v2972_v2 }
 0x5a3   : > { %2057 = vmatpush.msrb.mxu2 %v2974_v3 }
 0x60d   : > { %v1704_v7 = vpop.f32.mrf.mxu0 }
 0x60f   : > { %v1731_v10 = vpop.f32.mrf.mxu1 }
 0x611   : > { %v1674_v4 = vpop.f32.mrf.mxu3 }
 0x619   : > { %v1633_v5 = vpop.f32.mrf.mxu2  ;;  %v1789_v15 = vpop.f32.mrf.mxu3 }
 0x61a   : > { %v1675_v6 = vadd.f32 %v1674_v4, %v1633_v5  ;;  %v2036_v4 = vld [vmem:[%s2768_s1 + $0x20] sm:$0xff]  ;;  %v2035_v5 = vld [vmem:[%s2768_s1 + $0x18] sm:$0xff] }
 0x61c   : > { %v1705_v8 = vadd.f32 %v1704_v7, %v1675_v6  ;;  %v2034_v6 = vld [vmem:[%s2768_s1 + $0x10] sm:$0xff]  ;;  %v2979_v7 = vand.u32 4294901760, %v2036_v4 }
 0x61e   : > { %v1732_v11 = vadd.f32 %v1731_v10, %v1705_v8  ;;  %v2981_v8 = vand.u32 4294901760, %v2035_v5  ;;  %v2983_v10 = vand.u32 4294901760, %v2034_v6  ;;  %2059 = vmatpush.msrb.mxu2 %v2979_v7 }
 0x620   : > { %v3007_v21 = vsub.f32 %v2034_v6, %v2983_v10  ;;  %2061 = vmatpush.msrb.mxu2 %v2981_v8 }
 0x621   : > { %v1764_v13 = vpop.f32.mrf.mxu2 }
 0x622   : > { %v1765_v14 = vadd.f32 %v1764_v13, %v1732_v11  ;;  %v2033_v11 = vld [vmem:[%s2768_s1 + $0x8] sm:$0xff]  ;;  %v2032_v13 = vld [vmem:[%s2768_s1] sm:$0xff]  ;;  %v2117_v33 = vand.u32 4294901760, %v3007_v21  ;;  %2063 = vmatpush.msrb.mxu2 %v2983_v10 }
 0x623   : > { %v3009_v22 = vand.u32 4294901760, %v2032_v13 }
 0x624   : > { %v1790_v16 = vadd.f32 %v1789_v15, %v1765_v14  ;;  %v2988_v14 = vsub.f32 %v2039_v62, %v2970_v1  ;;  %v2991_v15 = vsub.f32 %v2038_v63, %v2972_v2 }
 0x625   : > { %v3033_v35 = vsub.f32 %v2032_v13, %v3009_v22 }
 0x626   : > { %v2950_v9 = vadd.f32 %v2570_v17, %v1790_v16  ;;  %v2994_v16 = vsub.f32 %v2037_v0, %v2974_v3  ;;  %v2998_v17 = vand.u32 4294901760, %v2033_v11  ;;  %v2087_v23 = vand.u32 4294901760, %v2988_v14 }
 0x627   : > { %v2093_v24 = vand.u32 4294901760, %v2991_v15 }
 0x628   : > { %v1794_v19 = vmul.f32 %v2950_v9, %v2950_v9  ;;  %v2099_v25 = vand.u32 4294901760, %v2994_v16  ;;  %v3018_v27 = vsub.f32 %v2033_v11, %v2998_v17  ;;  %v2088_v28 = vsub.f32 %v2988_v14, %v2087_v23  ;;  %2065 = vmatpush.msrb.mxu2 %v2998_v17 }
 0x629   : > { %v2094_v29 = vsub.f32 %v2991_v15, %v2093_v24 }
 0x62a   : > { %v1795_v20 = vsel %vm586_vm1, %v1794_v19, 0.0  ;;  %v3001_v19 = vsub.f32 %v2036_v4, %v2979_v7  ;;  %v2100_v30 = vsub.f32 %v2994_v16, %v2099_v25  ;;  %v2089_v37 = vand.u32 4294901760, %v2088_v28  ;;  %2067 = vmatpush.msrb.mxu2 %v3009_v22 }
 0x62b   : > { %1796 = vadd.xlane.f32.xlu1 %v1795_v20  ;;  %v3004_v20 = vsub.f32 %v2035_v5, %v2981_v8  ;;  %v2095_v12 = vand.u32 4294901760, %v2094_v29  ;;  %v2123_v42 = vand.u32 4294901760, %v3018_v27 }
 0x62c   : > { %v2105_v26 = vand.u32 4294901760, %v3001_v19  ;;  %2090 = vmatpush.msrb.mxu3 %v2089_v37  ;;  %v2101_v58 = vand.u32 4294901760, %v2100_v30 }
 0x62d   : > { %v2111_v31 = vand.u32 4294901760, %v3004_v20 }
 0x62e   : > { %v2106_v38 = vsub.f32 %v3001_v19, %v2105_v26  ;;  %2096 = vmatpush.msrb.mxu3 %v2095_v12 }
 0x62f   : > { %v2112_v41 = vsub.f32 %v3004_v20, %v2111_v31 }
 0x630   : > { %2102 = vmatpush.msrb.mxu3 %v2101_v58 }
 0x69e   : > { %v1797_v43 = vpop.xlane.xlu1 %1796 }
 0x69f   : > { %v1798_v44 = vmul.f32 %v1797_v43, %v2787_v34  ;;  %v2107_v43 = vand.u32 4294901760, %v2106_v38 }
 0x6a1   : > { %v1799_v45 = vadd.f32 1e-06, %v1798_v44  ;;  %v2118_v44 = vsub.f32 %v3007_v21, %v2117_v33  ;;  %2108 = vmatpush.msrb.mxu3 %v2107_v43 }
 0x6a3   : > { %2564 = vrsqrt.f32 %v1799_v45  ;;  %vm1806_vm10 = vweird.f32 %v1799_v45 }
 0x6a9   : > { %v2565_v46 = vpop.eup %2564 }
 0x6aa   : > { %v1801_v47 = vmul.f32 %v2565_v46, %v1799_v45  ;;  %vm1807_vm9 = vweird.f32 %v2565_v46  ;;  %v2129_v45 = vand.u32 4294901760, %v3033_v35 }
 0x6ab   : > { %vm1808_vm11 = vmor %vm1806_vm10, %vm1807_vm9 }
 0x6ac   : > { %v1802_v48 = vmul.f32 %v2565_v46, %v1801_v47 }
 0x6ae   : > { %v1803_v49 = vmul.f32 0.5, %v1802_v48  ;;  %v2113_v48 = vand.u32 4294901760, %v2112_v41 }
 0x6b0   : > { %v1804_v50 = vsub.f32 1.5, %v1803_v49  ;;  %v2124_v49 = vsub.f32 %v3018_v27, %v2123_v42  ;;  %2114 = vmatpush.msrb.mxu3 %v2113_v48 }
 0x6b2   : > { %v1805_v51 = vmul.f32 %v2565_v46, %v1804_v50 }
 0x6b4   : > { %v1809_v34 = vsel %vm1808_vm11, %v2565_v46, %v1805_v51 }
 0x6b5   : > { %v1810_v53 = vmul.f32 %v1809_v34, %v2950_v9  ;;  %v2130_v34 = vsub.f32 %v3033_v35, %v2129_v45 }
 0x6b7   : > { %v1814_v54 = vmul.f32 %v2543_v52, %v1810_v53  ;;  %v2119_v52 = vand.u32 4294901760, %v2118_v44 }
 0x6b9   : > { %v1820_v55 = vsel %vm586_vm1, %v1814_v54, 0  ;;  %2120 = vmatpush.msrb.mxu3 %v2119_v52 }
 0x6ba   : > { %v1842_v56 = vand.u32 4294901760, %v1820_v55 }
 0x6bc   : > { %1888 = vmatmul.f32.vlgmr.msra.gmra.mxu1 %v1842_v56  ;;  %v1843_v57 = vsub.f32 %v1820_v55, %v1842_v56  ;;  %v2125_v55 = vand.u32 4294901760, %v2124_v49 }
 0x6bd   : > { %2185 = vmatpush.msra.mxu1 %v2970_v1 }
 0x6be   : > { %1918 = vmatmul.f32.vlgmr.msra.gmra.mxu2 %v1843_v57  ;;  %v1844_v18 = vand.u32 4294901760, %v1843_v57  ;;  %2126 = vmatpush.msrb.mxu3 %v2125_v55 }
 0x6bf   : > { %2187 = vmatpush.msra.mxu1 %v2972_v2  ;;  %2218 = vmatpush.msra.mxu2 %v2087_v23 }
 0x6c0   : > { %1945 = vmatmul.f32.vlgmr.msra.gmra.mxu3 %v1844_v18  ;;  %v1845_v60 = vsub.f32 %v1843_v57, %v1844_v18 }
 0x6c1   : > { %2189 = vmatpush.msra.mxu1 %v2974_v3  ;;  %2222 = vmatpush.msra.mxu2 %v2093_v24 }
 0x6c2   : > { %v1846_v61 = vand.u32 4294901760, %v1845_v60 }
 0x6c3   : > { %2191 = vmatpush.msra.mxu1 %v2979_v7  ;;  %2226 = vmatpush.msra.mxu2 %v2099_v25 }
 0x6c4   : > { %1847 = vmatmul.f32.vlgmr.msra.gmra.mxu0 %v1846_v61  ;;  %2003 = vmatmul.f32.vlgmr.msrb.gmra.mxu1 %v1842_v56 }
 0x6c5   : > { %2148 = vmatpush.msra.mxu0 %v2988_v14  ;;  %2193 = vmatpush.msra.mxu1 %v2981_v8 }
 0x6c6   : > { %2230 = vmatpush.msra.mxu2 %v2105_v26 }
 0x6c7   : > { %2151 = vmatpush.msra.mxu0 %v2991_v15  ;;  %2195 = vmatpush.msra.mxu1 %v2983_v10 }
 0x6c8   : > { %2234 = vmatpush.msra.mxu2 %v2111_v31 }
 0x6c9   : > { %2154 = vmatpush.msra.mxu0 %v2994_v16  ;;  %2197 = vmatpush.msra.mxu1 %v2998_v17 }
 0x6ca   : > { %2238 = vmatpush.msra.mxu2 %v2117_v33 }
 0x6cb   : > { %2157 = vmatpush.msra.mxu0 %v3001_v19  ;;  %2199 = vmatpush.msra.mxu1 %v3009_v22 }
 0x6cc   : > { %1978 = vmatmul.f32.vlgmr.msrb.gmra.mxu0 %v1842_v56  ;;  %v2131_v56 = vand.u32 4294901760, %v2130_v34  ;;  %2242 = vmatpush.msra.mxu2 %v2123_v42 }
 0x6cd   : > { %2160 = vmatpush.msra.mxu0 %v3004_v20 }
 0x6ce   : > { %2132 = vmatpush.msrb.mxu3 %v2131_v56  ;;  %2246 = vmatpush.msra.mxu2 %v2129_v45 }
 0x6cf   : > { %2163 = vmatpush.msra.mxu0 %v3007_v21 }
 0x6d0   : > { %2261 = vmatpush.msra.mxu3 %v2970_v1 }
 0x6d1   : > { %2166 = vmatpush.msra.mxu0 %v3018_v27 }
 0x6d2   : > { %2263 = vmatpush.msra.mxu3 %v2972_v2 }
 0x6d3   : > { %2169 = vmatpush.msra.mxu0 %v3033_v35 }
 0x6d4   : > { %2265 = vmatpush.msra.mxu3 %v2974_v3 }
 0x6d6   : > { %2267 = vmatpush.msra.mxu3 %v2979_v7 }
 0x6d8   : > { %2269 = vmatpush.msra.mxu3 %v2981_v8 }
 0x6da   : > { %2271 = vmatpush.msra.mxu3 %v2983_v10 }
 0x6dc   : > { %2273 = vmatpush.msra.mxu3 %v2998_v17 }
 0x6de   : > { %2275 = vmatpush.msra.mxu3 %v3009_v22 }
 0x739   : > { %v1889_v32 = vpop.f32.mrf.mxu1 }
 0x741   : > { %v1848_v59 = vpop.f32.mrf.mxu0  ;;  %v1919_v39 = vpop.f32.mrf.mxu2 }
 0x742   : > { %v1890_v36 = vadd.f32 %v1889_v32, %v1848_v59  ;;  %v2004_v53 = vpop.f32.mrf.mxu1 }
 0x743   : > { %v1946_v46 = vpop.f32.mrf.mxu3 }
 0x744   : > { %v1920_v40 = vadd.f32 %v1919_v39, %v1890_v36 }
 0x746   : > { %v1947_v47 = vadd.f32 %v1946_v46, %v1920_v40 }
 0x749   : > { %v1979_v50 = vpop.f32.mrf.mxu0 }
 0x74a   : > { %v1980_v51 = vadd.f32 %v1979_v50, %v1947_v47 }
 0x74c   : > { %v2005_v54 = vadd.f32 %v2004_v53, %v1980_v51 }
 0x74e   : > { %2028 = vrot.lane.b32.xlu2 %v2005_v54, %s2613_s16  ;;  %v2480_v57 = vmul.f32 -1.442695, %v2005_v54 }
 0x750   : > { %2566 = vpow2.f32 %v2480_v57 }
 0x756   : > { %v2567_v18 = vpop.eup %2566 }
 0x757   : > { %v2010_v60 = vadd.f32 1.0, %v2567_v18 }
 0x759   : > { %2568 = vrcp.f32 %v2010_v60  ;;  %v2022_v2 = vand.u32 2147483648, %v2010_v60  ;;  %vm2016_vm13 = vweird.f32 %v2010_v60  ;;  %v2020_v3 = vand.u32 2147483647, %v2010_v60 }
 0x75b   : > { %v2023_v5 = vor.u32 1.1754944e-38, %v2022_v2  ;;  %vm2021_vm15 = vcmp.eq.f32.partialorder %v2020_v3, 8.507059e+37 }
 0x75f   : > { %v2569_v61 = vpop.eup %2568 }
 0x760   : > { %v2012_v62 = vmul.f32 %v2569_v61, %v2010_v60  ;;  %vm2017_vm12 = vweird.f32 %v2569_v61 }
 0x761   : > { %vm2018_vm14 = vmor %vm2016_vm13, %vm2017_vm12 }
 0x762   : > { %v2013_v63 = vsub.f32 1.0, %v2012_v62 }
 0x764   : > { %v2014_v0 = vmul.f32 %v2569_v61, %v2013_v63 }
 0x766   : > { %v2015_v1 = vadd.f32 %v2569_v61, %v2014_v0 }
 0x768   : > { %v2019_v4 = vsel %vm2018_vm14, %v2569_v61, %v2015_v1 }
 0x769   : > { %v2024_v6 = vsel %vm2021_vm15, %v2023_v5, %v2019_v4 }
 0x76a   : > { %v2026_v7 = vmul.f32 %v2024_v6, %v2005_v54 }
 0x7a8   : > { %v2029_v8 = vpop.permute.xlu2 %2028 }
 0x7a9   : > { %v2031_v10 = vmul.f32 %v2029_v8, %v2026_v7 }
 0x7ab   : > { %v2042_v11 = vsel %vm2040_vm0, %v2031_v10, 0 }
 0x7ac   : > { %v2068_v13 = vand.u32 4294901760, %v2042_v11 }
 0x7ae   : > { %v2069_v14 = vsub.f32 %v2042_v11, %v2068_v13  ;;  %2134 = vmatmul.f32.vlgmr.msrb.gmra.mxu3 %v2068_v13 }
 0x7b0   : > { %2172 = vmatmul.f32.vlgmr.msra.gmra.mxu0 %v2069_v14  ;;  %v2070_v15 = vand.u32 4294901760, %v2069_v14 }
 0x7b2   : > { %2203 = vmatmul.f32.vlgmr.msra.gmra.mxu1 %v2070_v15  ;;  %v2071_v16 = vsub.f32 %v2069_v14, %v2070_v15 }
 0x7b4   : > { %v2072_v17 = vand.u32 4294901760, %v2071_v16 }
 0x7b6   : > { %2073 = vmatmul.f32.vlgmr.msrb.gmra.mxu2 %v2072_v17  ;;  %2277 = vmatmul.f32.vlgmr.msra.gmra.mxu3 %v2068_v13 }
 0x7be   : > { %2248 = vmatmul.f32.vlgmr.msra.gmra.mxu2 %v2068_v13 }
 0x82d   : > { %v2173_v22 = vpop.f32.mrf.mxu0 }
 0x82f   : > { %v2204_v24 = vpop.f32.mrf.mxu1 }
 0x831   : > { %v2135_v19 = vpop.f32.mrf.mxu3 }
 0x839   : > { %v2074_v20 = vpop.f32.mrf.mxu2  ;;  %v2278_v28 = vpop.f32.mrf.mxu3 }
 0x83a   : > { %v2136_v21 = vadd.f32 %v2135_v19, %v2074_v20 }
 0x83c   : > { %v2174_v23 = vadd.f32 %v2173_v22, %v2136_v21 }
 0x83e   : > { %v2205_v25 = vadd.f32 %v2204_v24, %v2174_v23 }
 0x841   : > { %v2249_v26 = vpop.f32.mrf.mxu2 }
 0x842   : > { %v2250_v27 = vadd.f32 %v2249_v26, %v2205_v25 }
 0x844   : > { %v2279_v29 = vadd.f32 %v2278_v28, %v2250_v27 }
 0x846   : > { %v2281_v30 = vadd.f32 %v2279_v29, %v2950_v9 }
 0x848   : > { %2282 = vst.msk [vmem:[%s2773_s2] sm:$0xff] %vm586_vm1, %v2281_v30 }
 0x849 PF: > { %s3126_s24 = sld [smem:[#allocation4_spill]] }
 0x84a   : > { %s3127_s17 = sld [smem:[#allocation2_spill]] }
 0x84b   : > { %s3128_s18 = sld [smem:[#allocation3_spill]] }
 0x84c   : > { %s3129_s19 = sld [smem:[#allocation5_spill]] }
 0x84d   : > { %s3130_s20 = sld [smem:[#allocation6_spill]] }
 0x84f   : > { %s21_s21 = sadd.s32 1, %s3126_s24  }
 0x850   : > { %p18_p8 = scmp.ge.s32.totalorder %s21_s21, 6  }
 0x852   :  { %20 = sbr.rel (!%p18_p8) target bundleno = 6 (0x6), region = 128 }

</bundles_post_ra>
